<compile_context>
chip_gen: v7x
topology: tpu7x:2x2x1
jax: 0.10.0
libtpu: 0.0.40
codegen_flags: <defaults>
</compile_context>

<pallas_src>
import jax
import jax.numpy as jnp
from jax import lax
from jax.experimental import pallas as pl
from jax.experimental.pallas import tpu as pltpu
import numpy as np


def lstm_fc_kernel(x_ref, wih_ref, whh_ref, b_ref, wfc_ref, bfc_ref,
                   out_ref, gx_scr, h_scr, c_scr):
    """x_ref:   (Tt, Bt, Ep)  time-major tile of embedded inputs (pipelined over T)
       wih_ref: (Ep, 4Hp)     input->gates weights (x @ W layout, gate-padded, VMEM-resident)
       whh_ref: (Hp, 4Hp)     hidden->gates weights (VMEM-resident)
       b_ref:   (1, 4Hp)      fused bias (b_ih + b_hh), f32
       wfc_ref: (Hp, Op)      final fc weights
       bfc_ref: (1, Op)       final fc bias, f32
       out_ref: (Bt, Op)      output block (resident across the time axis)
       gx_scr:  (Tt*Bt, 4Hp)  precomputed input-projection gates (f32)
       h_scr/c_scr: (Bt, Hp)  recurrent state carried across time-grid steps (f32)."""
    t_blk = pl.program_id(1)

    Bt, Hp = h_scr.shape
    Tt = x_ref.shape[0]
    Ep = x_ref.shape[2]

    @pl.when(t_blk == 0)
    def _init():
        h_scr[...] = jnp.zeros_like(h_scr)
        c_scr[...] = jnp.zeros_like(c_scr)

    # Hoisted input projection: ONE large MXU matmul covering every timestep of
    # this tile, with the (b_ih + b_hh) bias folded in (f32 accumulation).  Only
    # the recurrent h @ W_hh matmul stays on the serial critical path below.
    x2 = x_ref[...].reshape(Tt * Bt, Ep)      # collapse leading dims; tile-preserving
    gx_scr[...] = (jnp.dot(x2, wih_ref[...], preferred_element_type=jnp.float32)
                   + b_ref[...])

    def step(t, carry):
        # h / c live in vregs across the loop: no per-step VMEM round-trip.
        h, c = carry
        whh = whh_ref[...]                    # indexed in-loop: Mosaic CSEs / streams RHS
        row = pl.multiple_of(t * Bt, Bt)
        gates = gx_scr[pl.ds(row, Bt), :] + jnp.dot(
            h.astype(whh.dtype), whh, preferred_element_type=jnp.float32)  # (Bt, 4Hp) f32
        # PyTorch gate order: input, forget, cell(g), output — lane-aligned slices.
        i_g = jax.nn.sigmoid(gates[:, 0 * Hp:1 * Hp])
        f_g = jax.nn.sigmoid(gates[:, 1 * Hp:2 * Hp])
        g_g = jnp.tanh(gates[:, 2 * Hp:3 * Hp])
        o_g = jax.nn.sigmoid(gates[:, 3 * Hp:4 * Hp])
        c_new = f_g * c + i_g * g_g
        h_new = o_g * jnp.tanh(c_new)
        return (h_new, c_new)

    # Partial unroll keeps the MXU-push / EUP-overlap benefit without blowing
    # vreg live ranges (and hence spills) on long time tiles.
    h_fin, c_fin = lax.fori_loop(0, Tt, step, (h_scr[...], c_scr[...]),
                                 unroll=min(Tt, 8))
    h_scr[...] = h_fin
    c_scr[...] = c_fin

    @pl.when(t_blk == pl.num_programs(1) - 1)
    def _finalize():
        wfc = wfc_ref[...]
        out_ref[...] = (jnp.dot(h_fin.astype(wfc.dtype), wfc,
                                preferred_element_type=jnp.float32)
                        + bfc_ref[...]).astype(out_ref.dtype)


def _round_up(x, m):
    return ((x + m - 1) // m) * m


def lstm_model_forward(tokens, params, *, t_tile=None, compute_dtype=jnp.bfloat16):
    """tokens: (B, T) int32.  Returns (B, output_dim) float32.

    compute_dtype: dtype of the MXU matmul operands.  bfloat16 (default) uses the
    bf16-native MXU path and halves resident weight VMEM; gate math / cell state /
    accumulation stay f32.  Use jnp.float32 for bit-tight PyTorch parity."""
    emb = params["embedding"]          # (V, E)
    w_ih = params["w_ih"]              # (4H, E)   PyTorch layout
    w_hh = params["w_hh"]              # (4H, H)
    b_ih = params["b_ih"]              # (4H,)
    b_hh = params["b_hh"]              # (4H,)
    w_fc = params["w_fc"]              # (O, H)
    b_fc = params["b_fc"]              # (O,)

    B, T = tokens.shape
    V, E = emb.shape
    H = w_hh.shape[1]
    O = w_fc.shape[0]

    # Hardware-quantum padding: batch -> sublanes (8), feature dims -> lanes (128).
    Bp = _round_up(max(B, 8), 8)
    if Bp >= 16:
        # Two batch shards -> the leading "parallel" grid axis can be split across
        # the two TensorCores of a v7x chip.  No-op at small B / on v5e, v6e.
        Bp = _round_up(Bp, 16)
        b_tile = Bp // 2
    else:
        b_tile = Bp
    Ep = _round_up(E, 128)
    Hp = _round_up(H, 128)   # per-gate padding; no waste for H=128 (see review note)
    Op = _round_up(O, 128)

    itemsize = jnp.dtype(compute_dtype).itemsize

    # Time-tile heuristic: give the hoisted x @ W_ih matmul >= 256 rows of M and
    # amortize per-grid-step overhead; short sequences (e.g. T=8) collapse to a
    # single grid step.  Capped so gx_scr + double-buffered x stay well under the
    # scoped VMEM limit (matters on v7x's 64 MiB VMEM).
    if t_tile is None:
        desired = max(1, -(-256 // b_tile))                      # ceil(256 / b_tile)
        if desired >= T:
            t_tile = T
        else:
            t_tile = next((d for d in range(desired, T + 1) if T % d == 0), T)
        bytes_per_t = b_tile * (4 * Hp * 4 + 2 * Ep * itemsize)
        max_t = max(1, (12 * 1024 * 1024) // bytes_per_t)
        if t_tile > max_t:
            t_tile = next((d for d in range(min(max_t, T), 0, -1) if T % d == 0), 1)
    assert T % t_tile == 0, "t_tile must divide T"

    f32 = jnp.float32

    # ---- weights: transpose to x @ W layout, padding each gate block separately
    # so the four gates land on 128-lane boundaries inside the 4Hp axis.
    def pad_gates(w, in_dim, in_pad):
        w4 = w.reshape(4, H, in_dim).astype(f32)
        w4 = jnp.pad(w4, ((0, 0), (0, Hp - H), (0, in_pad - in_dim)))
        return jnp.transpose(w4, (2, 0, 1)).reshape(in_pad, 4 * Hp)

    w_ih_t = pad_gates(w_ih, E, Ep).astype(compute_dtype)                # (Ep, 4Hp)
    w_hh_t = pad_gates(w_hh, H, Hp).astype(compute_dtype)                # (Hp, 4Hp)
    b4 = (b_ih + b_hh).reshape(4, H).astype(f32)
    b_all = jnp.pad(b4, ((0, 0), (0, Hp - H))).reshape(1, 4 * Hp)        # (1, 4Hp) f32

    w_fc_t = jnp.pad(jnp.transpose(w_fc).astype(f32),
                     ((0, Hp - H), (0, Op - O))).astype(compute_dtype)   # (Hp, Op)
    b_fc2 = jnp.pad(b_fc.astype(f32), (0, Op - O)).reshape(1, Op)        # (1, Op) f32

    # ---- embedding gather directly in time-major (T, Bp, Ep) layout: no activation
    # transpose materialized.  Padded batch rows reuse token 0 and are sliced off.
    # TODO(synk): for large T*B*E, gather embedding rows inside the kernel (scalar-
    # prefetch token ids + DMA) to avoid the HBM round-trip of the gathered slab.
    emb_p = jnp.pad(emb.astype(f32), ((0, 0), (0, Ep - E)))              # (V, Ep)
    tok_p = jnp.pad(tokens.astype(jnp.int32), ((0, Bp - B), (0, 0)))     # (Bp, T)
    x_tbe = emb_p[tok_p.T].astype(compute_dtype)                         # (T, Bp, Ep)

    grid = (Bp // b_tile, T // t_tile)

    # Single-buffered, whole-array VMEM-resident weights; x is the only pipelined
    # (double-buffered) input.
    weight_spec = pl.BlockSpec(memory_space=pltpu.MemorySpace.VMEM)

    # Resident VMEM estimate; only raise the scoped limit above the 32 MiB default
    # when actually needed (keeps the common/small case untouched).
    vmem_est = (2 * t_tile * b_tile * Ep * itemsize          # x (double-buffered)
                + t_tile * b_tile * 4 * Hp * 4               # gx scratch
                + 2 * b_tile * Hp * 4                        # h, c
                + (Ep + Hp) * 4 * Hp * itemsize              # W_ih, W_hh
                + Hp * Op * itemsize                         # W_fc
                + (4 * Hp + Op) * 4                          # biases
                + 2 * b_tile * Op * 4)                       # out block
    cp_kwargs = dict(dimension_semantics=("parallel", "arbitrary"))
    if vmem_est > 32 * 1024 * 1024:
        cp_kwargs["vmem_limit_bytes"] = int(min(vmem_est * 5 // 4 + (2 << 20),
                                                128 * 1024 * 1024))

    out = pl.pallas_call(
        lstm_fc_kernel,
        out_shape=jax.ShapeDtypeStruct((Bp, Op), jnp.float32),
        grid_spec=pltpu.PrefetchScalarGridSpec(
            num_scalar_prefetch=0,
            grid=grid,
            in_specs=[
                pl.BlockSpec((t_tile, b_tile, Ep), lambda b, t: (t, b, 0)),  # x: pipelined
                weight_spec,   # W_ih   (VMEM-resident, single buffer)
                weight_spec,   # W_hh
                weight_spec,   # fused bias
                weight_spec,   # W_fc
                weight_spec,   # b_fc
            ],
            out_specs=pl.BlockSpec((b_tile, Op), lambda b, t: (b, 0)),
            scratch_shapes=[
                pltpu.VMEM((t_tile * b_tile, 4 * Hp), jnp.float32),   # precomputed x-gates
                pltpu.VMEM((b_tile, Hp), jnp.float32),                # h state
                pltpu.VMEM((b_tile, Hp), jnp.float32),                # c state
            ],
        ),
        compiler_params=pltpu.CompilerParams(**cp_kwargs),
    )(x_tbe, w_ih_t, w_hh_t, b_all, w_fc_t, b_fc2)

    return out[:B, :O]


def init_params(key, vocab_size, embedding_dim, hidden_dim, output_dim):
    ks = jax.random.split(key, 7)
    s = 0.1
    return {
        "embedding": s * jax.random.normal(ks[0], (vocab_size, embedding_dim), jnp.float32),
        "w_ih": s * jax.random.normal(ks[1], (4 * hidden_dim, embedding_dim), jnp.float32),
        "w_hh": s * jax.random.normal(ks[2], (4 * hidden_dim, hidden_dim), jnp.float32),
        "b_ih": s * jax.random.normal(ks[3], (4 * hidden_dim,), jnp.float32),
        "b_hh": s * jax.random.normal(ks[4], (4 * hidden_dim,), jnp.float32),
        "w_fc": s * jax.random.normal(ks[5], (output_dim, hidden_dim), jnp.float32),
        "b_fc": s * jax.random.normal(ks[6], (output_dim,), jnp.float32),
    }


def reference_forward(tokens, params):
    """Pure-JAX reference matching PyTorch LSTM semantics (for correctness check)."""
    emb = params["embedding"]
    w_ih, w_hh = params["w_ih"], params["w_hh"]
    b = params["b_ih"] + params["b_hh"]
    H = w_hh.shape[1]
    x = emb[tokens]                                   # (B, T, E)
    B = x.shape[0]

    def step(carry, x_t):
        h, c = carry
        gates = x_t @ w_ih.T + h @ w_hh.T + b
        i = jax.nn.sigmoid(gates[:, 0 * H:1 * H])
        f = jax.nn.sigmoid(gates[:, 1 * H:2 * H])
        g = jnp.tanh(gates[:, 2 * H:3 * H])
        o = jax.nn.sigmoid(gates[:, 3 * H:4 * H])
        c = f * c + i * g
        h = o * jnp.tanh(c)
        return (h, c), None

    h0 = jnp.zeros((B, H), jnp.float32)
    c0 = jnp.zeros((B, H), jnp.float32)
    (h, _), _ = lax.scan(step, (h0, c0), jnp.transpose(x, (1, 0, 2)))
    return h @ params["w_fc"].T + params["b_fc"]


if __name__ == "__main__":
    # Small shapes consistent with the module's forward: (B, T) int tokens.
    batch = 2
    seq_len = 8
    vocab_size = 50
    embedding_dim = 100   # matches the module spec; exercises E -> 128 padding
    hidden_dim = 128
    output_dim = 8

    key = jax.random.PRNGKey(0)
    k_tok, k_par = jax.random.split(key)
    tokens = jax.random.randint(k_tok, (batch, seq_len), 0, vocab_size, dtype=jnp.int32)
    params = init_params(k_par, vocab_size, embedding_dim, hidden_dim, output_dim)

    ref = jax.block_until_ready(reference_forward(tokens, params))

    # Exact-semantics path: f32 matmul operands, tight tolerance vs PyTorch math.
    out_f32 = jax.block_until_ready(
        lstm_model_forward(tokens, params, compute_dtype=jnp.float32))
    assert out_f32.shape == (batch, output_dim)
    assert out_f32.dtype == jnp.float32
    np.testing.assert_allclose(np.asarray(out_f32), np.asarray(ref), rtol=2e-4, atol=2e-4)

    # Performance default: bf16 MXU operands (f32 gate math / accumulation) — looser tol.
    out_bf16 = jax.block_until_ready(lstm_model_forward(tokens, params))
    assert out_bf16.shape == (batch, output_dim)
    assert out_bf16.dtype == jnp.float32
    np.testing.assert_allclose(np.asarray(out_bf16), np.asarray(ref), rtol=2e-2, atol=2e-2)

    print("KERNEL_OK")
</pallas_src>

<mosaic_0001>
module attributes {stable_mosaic.version = 11 : i64} {
  func.func @lstm_fc_kernel(%arg0: i32, %arg1: i32, %arg2: memref<8x8x128xf32, #tpu.memory_space<vmem>>, %arg3: memref<128x512xf32, #tpu.memory_space<vmem>>, %arg4: memref<128x512xf32, #tpu.memory_space<vmem>>, %arg5: memref<1x512xf32, #tpu.memory_space<vmem>>, %arg6: memref<128x128xf32, #tpu.memory_space<vmem>>, %arg7: memref<1x128xf32, #tpu.memory_space<vmem>>, %arg8: memref<8x128xf32, #tpu.memory_space<vmem>>, %arg9: memref<64x512xf32, #tpu.memory_space<vmem>>, %arg10: memref<8x128xf32, #tpu.memory_space<vmem>>, %arg11: memref<8x128xf32, #tpu.memory_space<vmem>>) attributes {dimension_semantics = [#tpu.dimension_semantics<parallel>, #tpu.dimension_semantics<arbitrary>], iteration_bounds = array<i64: 1, 1>, scalar_prefetch = 0 : i64, scratch_operands = 3 : i64, tpu.core_type = #tpu.core_type<tc>, window_params = [{transform_indices = @transform_0, window_bounds = array<i64: 8, 8, 128>}, {pipeline_mode = #tpu.pipeline_mode<synchronous>, transform_indices = @transform_1, window_bounds = array<i64: 128, 512>}, {pipeline_mode = #tpu.pipeline_mode<synchronous>, transform_indices = @transform_2, window_bounds = array<i64: 128, 512>}, {pipeline_mode = #tpu.pipeline_mode<synchronous>, transform_indices = @transform_3, window_bounds = array<i64: 1, 512>}, {pipeline_mode = #tpu.pipeline_mode<synchronous>, transform_indices = @transform_4, window_bounds = array<i64: 128, 128>}, {pipeline_mode = #tpu.pipeline_mode<synchronous>, transform_indices = @transform_5, window_bounds = array<i64: 1, 128>}, {transform_indices = @transform_6, window_bounds = array<i64: 8, 128>}]} {
    %c0_i32 = arith.constant 0 : i32
    %0 = arith.cmpi eq, %arg1, %c0_i32 : i32
    %1 = arith.extui %0 : i1 to i32
    %c0_i32_0 = arith.constant 0 : i32
    %2 = arith.cmpi ne, %1, %c0_i32_0 : i32
    scf.if %2 {
      %cst_84 = arith.constant 0.000000e+00 : f32
      %274 = vector.broadcast %cst_84 : f32 to vector<8x128xf32>
      %c0_85 = arith.constant 0 : index
      %c0_86 = arith.constant 0 : index
      %275 = vector.load %arg10[%c0_85, %c0_86] : memref<8x128xf32, #tpu.memory_space<vmem>>, vector<8x128xf32>
      tpu.vector_store %arg10[%c0_85, %c0_86], %274 {strides = array<i32>} : memref<8x128xf32, #tpu.memory_space<vmem>>, vector<8x128xf32>,
      %cst_87 = arith.constant 0.000000e+00 : f32
      %276 = vector.broadcast %cst_87 : f32 to vector<8x128xf32>
      %c0_88 = arith.constant 0 : index
      %c0_89 = arith.constant 0 : index
      %277 = vector.load %arg11[%c0_88, %c0_89] : memref<8x128xf32, #tpu.memory_space<vmem>>, vector<8x128xf32>
      tpu.vector_store %arg11[%c0_88, %c0_89], %276 {strides = array<i32>} : memref<8x128xf32, #tpu.memory_space<vmem>>, vector<8x128xf32>,
    } else {
    }
    %c0 = arith.constant 0 : index
    %c0_1 = arith.constant 0 : index
    %c0_2 = arith.constant 0 : index
    %3 = vector.load %arg2[%c0, %c0_1, %c0_2] : memref<8x8x128xf32, #tpu.memory_space<vmem>>, vector<8x8x128xf32>
    %4 = vector.shape_cast %3 : vector<8x8x128xf32> to vector<64x128xf32>
    %c0_3 = arith.constant 0 : index
    %c0_4 = arith.constant 0 : index
    %5 = vector.load %arg3[%c0_3, %c0_4] : memref<128x512xf32, #tpu.memory_space<vmem>>, vector<128x512xf32>
    %cst = arith.constant dense<0.000000e+00> : vector<64x512xf32>
    %6 = tpu.matmul %4, %5, %cst {dimension_numbers = #tpu.dot_dimension_numbers<[1], [0], [0], [1], [0, 0, 1, 1], [], []>} : vector<64x128xf32>, vector<128x512xf32>, vector<64x512xf32> -> vector<64x512xf32>
    %c0_5 = arith.constant 0 : index
    %c0_6 = arith.constant 0 : index
    %7 = vector.load %arg5[%c0_5, %c0_6] : memref<1x512xf32, #tpu.memory_space<vmem>>, vector<1x512xf32>
    %8 = vector.broadcast %7 : vector<1x512xf32> to vector<64x512xf32>
    %9 = arith.addf %6, %8 : vector<64x512xf32>
    %c0_7 = arith.constant 0 : index
    %c0_8 = arith.constant 0 : index
    %10 = vector.load %arg9[%c0_7, %c0_8] : memref<64x512xf32, #tpu.memory_space<vmem>>, vector<64x512xf32>
    tpu.vector_store %arg9[%c0_7, %c0_8], %9 {strides = array<i32>} : memref<64x512xf32, #tpu.memory_space<vmem>>, vector<64x512xf32>,
    %c0_9 = arith.constant 0 : index
    %c0_10 = arith.constant 0 : index
    %11 = vector.load %arg10[%c0_9, %c0_10] : memref<8x128xf32, #tpu.memory_space<vmem>>, vector<8x128xf32>
    %c0_11 = arith.constant 0 : index
    %c0_12 = arith.constant 0 : index
    %12 = vector.load %arg11[%c0_11, %c0_12] : memref<8x128xf32, #tpu.memory_space<vmem>>, vector<8x128xf32>
    %c0_i32_13 = arith.constant 0 : i32
    %c0_14 = arith.constant 0 : index
    %c0_15 = arith.constant 0 : index
    %13 = vector.load %arg4[%c0_14, %c0_15] : memref<128x512xf32, #tpu.memory_space<vmem>>, vector<128x512xf32>
    %c8_i32 = arith.constant 8 : i32
    %14 = arith.muli %c0_i32_13, %c8_i32 : i32
    %15 = tpu.assume_multiple %14, 8 : i32
    %16 = arith.index_cast %15 : i32 to index
    %c0_16 = arith.constant 0 : index
    %17 = vector.load %arg9[%16, %c0_16] : memref<64x512xf32, #tpu.memory_space<vmem>>, vector<8x512xf32>
    %cst_17 = arith.constant dense<0.000000e+00> : vector<8x512xf32>
    %18 = tpu.matmul %11, %13, %cst_17 {dimension_numbers = #tpu.dot_dimension_numbers<[1], [0], [0], [1], [0, 0, 1, 1], [], []>} : vector<8x128xf32>, vector<128x512xf32>, vector<8x512xf32> -> vector<8x512xf32>
    %19 = arith.addf %17, %18 : vector<8x512xf32>
    %20 = vector.extract_strided_slice %19 {offsets = [0, 0], sizes = [8, 128], strides = [1, 1]} : vector<8x512xf32> to vector<8x128xf32>
    %21 = arith.negf %20 : vector<8x128xf32>
    %22 = math.exp %21 : vector<8x128xf32>
    %cst_18 = arith.constant 1.000000e+00 : f32
    %23 = vector.broadcast %cst_18 : f32 to vector<8x128xf32>
    %24 = arith.addf %23, %22 : vector<8x128xf32>
    %25 = arith.divf %23, %24 : vector<8x128xf32>
    %26 = vector.extract_strided_slice %19 {offsets = [0, 128], sizes = [8, 128], strides = [1, 1]} : vector<8x512xf32> to vector<8x128xf32>
    %27 = arith.negf %26 : vector<8x128xf32>
    %28 = math.exp %27 : vector<8x128xf32>
    %cst_19 = arith.constant 1.000000e+00 : f32
    %29 = vector.broadcast %cst_19 : f32 to vector<8x128xf32>
    %30 = arith.addf %29, %28 : vector<8x128xf32>
    %31 = arith.divf %29, %30 : vector<8x128xf32>
    %32 = vector.extract_strided_slice %19 {offsets = [0, 256], sizes = [8, 128], strides = [1, 1]} : vector<8x512xf32> to vector<8x128xf32>
    %33 = math.tanh %32 : vector<8x128xf32>
    %34 = vector.extract_strided_slice %19 {offsets = [0, 384], sizes = [8, 128], strides = [1, 1]} : vector<8x512xf32> to vector<8x128xf32>
    %35 = arith.negf %34 : vector<8x128xf32>
    %36 = math.exp %35 : vector<8x128xf32>
    %cst_20 = arith.constant 1.000000e+00 : f32
    %37 = vector.broadcast %cst_20 : f32 to vector<8x128xf32>
    %38 = arith.addf %37, %36 : vector<8x128xf32>
    %39 = arith.divf %37, %38 : vector<8x128xf32>
    %40 = arith.mulf %31, %12 : vector<8x128xf32>
    %41 = arith.mulf %25, %33 : vector<8x128xf32>
    %42 = arith.addf %40, %41 : vector<8x128xf32>
    %43 = math.tanh %42 : vector<8x128xf32>
    %44 = arith.mulf %39, %43 : vector<8x128xf32>
    %c1_i32 = arith.constant 1 : i32
    %c0_21 = arith.constant 0 : index
    %c0_22 = arith.constant 0 : index
    %45 = vector.load %arg4[%c0_21, %c0_22] : memref<128x512xf32, #tpu.memory_space<vmem>>, vector<128x512xf32>
    %c8_i32_23 = arith.constant 8 : i32
    %46 = arith.muli %c1_i32, %c8_i32_23 : i32
    %47 = tpu.assume_multiple %46, 8 : i32
    %48 = arith.index_cast %47 : i32 to index
    %c0_24 = arith.constant 0 : index
    %49 = vector.load %arg9[%48, %c0_24] : memref<64x512xf32, #tpu.memory_space<vmem>>, vector<8x512xf32>
    %cst_25 = arith.constant dense<0.000000e+00> : vector<8x512xf32>
    %50 = tpu.matmul %44, %45, %cst_25 {dimension_numbers = #tpu.dot_dimension_numbers<[1], [0], [0], [1], [0, 0, 1, 1], [], []>} : vector<8x128xf32>, vector<128x512xf32>, vector<8x512xf32> -> vector<8x512xf32>
    %51 = arith.addf %49, %50 : vector<8x512xf32>
    %52 = vector.extract_strided_slice %51 {offsets = [0, 0], sizes = [8, 128], strides = [1, 1]} : vector<8x512xf32> to vector<8x128xf32>
    %53 = arith.negf %52 : vector<8x128xf32>
    %54 = math.exp %53 : vector<8x128xf32>
    %cst_26 = arith.constant 1.000000e+00 : f32
    %55 = vector.broadcast %cst_26 : f32 to vector<8x128xf32>
    %56 = arith.addf %55, %54 : vector<8x128xf32>
    %57 = arith.divf %55, %56 : vector<8x128xf32>
    %58 = vector.extract_strided_slice %51 {offsets = [0, 128], sizes = [8, 128], strides = [1, 1]} : vector<8x512xf32> to vector<8x128xf32>
    %59 = arith.negf %58 : vector<8x128xf32>
    %60 = math.exp %59 : vector<8x128xf32>
    %cst_27 = arith.constant 1.000000e+00 : f32
    %61 = vector.broadcast %cst_27 : f32 to vector<8x128xf32>
    %62 = arith.addf %61, %60 : vector<8x128xf32>
    %63 = arith.divf %61, %62 : vector<8x128xf32>
    %64 = vector.extract_strided_slice %51 {offsets = [0, 256], sizes = [8, 128], strides = [1, 1]} : vector<8x512xf32> to vector<8x128xf32>
    %65 = math.tanh %64 : vector<8x128xf32>
    %66 = vector.extract_strided_slice %51 {offsets = [0, 384], sizes = [8, 128], strides = [1, 1]} : vector<8x512xf32> to vector<8x128xf32>
    %67 = arith.negf %66 : vector<8x128xf32>
    %68 = math.exp %67 : vector<8x128xf32>
    %cst_28 = arith.constant 1.000000e+00 : f32
    %69 = vector.broadcast %cst_28 : f32 to vector<8x128xf32>
    %70 = arith.addf %69, %68 : vector<8x128xf32>
    %71 = arith.divf %69, %70 : vector<8x128xf32>
    %72 = arith.mulf %63, %42 : vector<8x128xf32>
    %73 = arith.mulf %57, %65 : vector<8x128xf32>
    %74 = arith.addf %72, %73 : vector<8x128xf32>
    %75 = math.tanh %74 : vector<8x128xf32>
    %76 = arith.mulf %71, %75 : vector<8x128xf32>
    %c2_i32 = arith.constant 2 : i32
    %c0_29 = arith.constant 0 : index
    %c0_30 = arith.constant 0 : index
    %77 = vector.load %arg4[%c0_29, %c0_30] : memref<128x512xf32, #tpu.memory_space<vmem>>, vector<128x512xf32>
    %c8_i32_31 = arith.constant 8 : i32
    %78 = arith.muli %c2_i32, %c8_i32_31 : i32
    %79 = tpu.assume_multiple %78, 8 : i32
    %80 = arith.index_cast %79 : i32 to index
    %c0_32 = arith.constant 0 : index
    %81 = vector.load %arg9[%80, %c0_32] : memref<64x512xf32, #tpu.memory_space<vmem>>, vector<8x512xf32>
    %cst_33 = arith.constant dense<0.000000e+00> : vector<8x512xf32>
    %82 = tpu.matmul %76, %77, %cst_33 {dimension_numbers = #tpu.dot_dimension_numbers<[1], [0], [0], [1], [0, 0, 1, 1], [], []>} : vector<8x128xf32>, vector<128x512xf32>, vector<8x512xf32> -> vector<8x512xf32>
    %83 = arith.addf %81, %82 : vector<8x512xf32>
    %84 = vector.extract_strided_slice %83 {offsets = [0, 0], sizes = [8, 128], strides = [1, 1]} : vector<8x512xf32> to vector<8x128xf32>
    %85 = arith.negf %84 : vector<8x128xf32>
    %86 = math.exp %85 : vector<8x128xf32>
    %cst_34 = arith.constant 1.000000e+00 : f32
    %87 = vector.broadcast %cst_34 : f32 to vector<8x128xf32>
    %88 = arith.addf %87, %86 : vector<8x128xf32>
    %89 = arith.divf %87, %88 : vector<8x128xf32>
    %90 = vector.extract_strided_slice %83 {offsets = [0, 128], sizes = [8, 128], strides = [1, 1]} : vector<8x512xf32> to vector<8x128xf32>
    %91 = arith.negf %90 : vector<8x128xf32>
    %92 = math.exp %91 : vector<8x128xf32>
    %cst_35 = arith.constant 1.000000e+00 : f32
    %93 = vector.broadcast %cst_35 : f32 to vector<8x128xf32>
    %94 = arith.addf %93, %92 : vector<8x128xf32>
    %95 = arith.divf %93, %94 : vector<8x128xf32>
    %96 = vector.extract_strided_slice %83 {offsets = [0, 256], sizes = [8, 128], strides = [1, 1]} : vector<8x512xf32> to vector<8x128xf32>
    %97 = math.tanh %96 : vector<8x128xf32>
    %98 = vector.extract_strided_slice %83 {offsets = [0, 384], sizes = [8, 128], strides = [1, 1]} : vector<8x512xf32> to vector<8x128xf32>
    %99 = arith.negf %98 : vector<8x128xf32>
    %100 = math.exp %99 : vector<8x128xf32>
    %cst_36 = arith.constant 1.000000e+00 : f32
    %101 = vector.broadcast %cst_36 : f32 to vector<8x128xf32>
    %102 = arith.addf %101, %100 : vector<8x128xf32>
    %103 = arith.divf %101, %102 : vector<8x128xf32>
    %104 = arith.mulf %95, %74 : vector<8x128xf32>
    %105 = arith.mulf %89, %97 : vector<8x128xf32>
    %106 = arith.addf %104, %105 : vector<8x128xf32>
    %107 = math.tanh %106 : vector<8x128xf32>
    %108 = arith.mulf %103, %107 : vector<8x128xf32>
    %c3_i32 = arith.constant 3 : i32
    %c0_37 = arith.constant 0 : index
    %c0_38 = arith.constant 0 : index
    %109 = vector.load %arg4[%c0_37, %c0_38] : memref<128x512xf32, #tpu.memory_space<vmem>>, vector<128x512xf32>
    %c8_i32_39 = arith.constant 8 : i32
    %110 = arith.muli %c3_i32, %c8_i32_39 : i32
    %111 = tpu.assume_multiple %110, 8 : i32
    %112 = arith.index_cast %111 : i32 to index
    %c0_40 = arith.constant 0 : index
    %113 = vector.load %arg9[%112, %c0_40] : memref<64x512xf32, #tpu.memory_space<vmem>>, vector<8x512xf32>
    %cst_41 = arith.constant dense<0.000000e+00> : vector<8x512xf32>
    %114 = tpu.matmul %108, %109, %cst_41 {dimension_numbers = #tpu.dot_dimension_numbers<[1], [0], [0], [1], [0, 0, 1, 1], [], []>} : vector<8x128xf32>, vector<128x512xf32>, vector<8x512xf32> -> vector<8x512xf32>
    %115 = arith.addf %113, %114 : vector<8x512xf32>
    %116 = vector.extract_strided_slice %115 {offsets = [0, 0], sizes = [8, 128], strides = [1, 1]} : vector<8x512xf32> to vector<8x128xf32>
    %117 = arith.negf %116 : vector<8x128xf32>
    %118 = math.exp %117 : vector<8x128xf32>
    %cst_42 = arith.constant 1.000000e+00 : f32
    %119 = vector.broadcast %cst_42 : f32 to vector<8x128xf32>
    %120 = arith.addf %119, %118 : vector<8x128xf32>
    %121 = arith.divf %119, %120 : vector<8x128xf32>
    %122 = vector.extract_strided_slice %115 {offsets = [0, 128], sizes = [8, 128], strides = [1, 1]} : vector<8x512xf32> to vector<8x128xf32>
    %123 = arith.negf %122 : vector<8x128xf32>
    %124 = math.exp %123 : vector<8x128xf32>
    %cst_43 = arith.constant 1.000000e+00 : f32
    %125 = vector.broadcast %cst_43 : f32 to vector<8x128xf32>
    %126 = arith.addf %125, %124 : vector<8x128xf32>
    %127 = arith.divf %125, %126 : vector<8x128xf32>
    %128 = vector.extract_strided_slice %115 {offsets = [0, 256], sizes = [8, 128], strides = [1, 1]} : vector<8x512xf32> to vector<8x128xf32>
    %129 = math.tanh %128 : vector<8x128xf32>
    %130 = vector.extract_strided_slice %115 {offsets = [0, 384], sizes = [8, 128], strides = [1, 1]} : vector<8x512xf32> to vector<8x128xf32>
    %131 = arith.negf %130 : vector<8x128xf32>
    %132 = math.exp %131 : vector<8x128xf32>
    %cst_44 = arith.constant 1.000000e+00 : f32
    %133 = vector.broadcast %cst_44 : f32 to vector<8x128xf32>
    %134 = arith.addf %133, %132 : vector<8x128xf32>
    %135 = arith.divf %133, %134 : vector<8x128xf32>
    %136 = arith.mulf %127, %106 : vector<8x128xf32>
    %137 = arith.mulf %121, %129 : vector<8x128xf32>
    %138 = arith.addf %136, %137 : vector<8x128xf32>
    %139 = math.tanh %138 : vector<8x128xf32>
    %140 = arith.mulf %135, %139 : vector<8x128xf32>
    %c4_i32 = arith.constant 4 : i32
    %c0_45 = arith.constant 0 : index
    %c0_46 = arith.constant 0 : index
    %141 = vector.load %arg4[%c0_45, %c0_46] : memref<128x512xf32, #tpu.memory_space<vmem>>, vector<128x512xf32>
    %c8_i32_47 = arith.constant 8 : i32
    %142 = arith.muli %c4_i32, %c8_i32_47 : i32
    %143 = tpu.assume_multiple %142, 8 : i32
    %144 = arith.index_cast %143 : i32 to index
    %c0_48 = arith.constant 0 : index
    %145 = vector.load %arg9[%144, %c0_48] : memref<64x512xf32, #tpu.memory_space<vmem>>, vector<8x512xf32>
    %cst_49 = arith.constant dense<0.000000e+00> : vector<8x512xf32>
    %146 = tpu.matmul %140, %141, %cst_49 {dimension_numbers = #tpu.dot_dimension_numbers<[1], [0], [0], [1], [0, 0, 1, 1], [], []>} : vector<8x128xf32>, vector<128x512xf32>, vector<8x512xf32> -> vector<8x512xf32>
    %147 = arith.addf %145, %146 : vector<8x512xf32>
    %148 = vector.extract_strided_slice %147 {offsets = [0, 0], sizes = [8, 128], strides = [1, 1]} : vector<8x512xf32> to vector<8x128xf32>
    %149 = arith.negf %148 : vector<8x128xf32>
    %150 = math.exp %149 : vector<8x128xf32>
    %cst_50 = arith.constant 1.000000e+00 : f32
    %151 = vector.broadcast %cst_50 : f32 to vector<8x128xf32>
    %152 = arith.addf %151, %150 : vector<8x128xf32>
    %153 = arith.divf %151, %152 : vector<8x128xf32>
    %154 = vector.extract_strided_slice %147 {offsets = [0, 128], sizes = [8, 128], strides = [1, 1]} : vector<8x512xf32> to vector<8x128xf32>
    %155 = arith.negf %154 : vector<8x128xf32>
    %156 = math.exp %155 : vector<8x128xf32>
    %cst_51 = arith.constant 1.000000e+00 : f32
    %157 = vector.broadcast %cst_51 : f32 to vector<8x128xf32>
    %158 = arith.addf %157, %156 : vector<8x128xf32>
    %159 = arith.divf %157, %158 : vector<8x128xf32>
    %160 = vector.extract_strided_slice %147 {offsets = [0, 256], sizes = [8, 128], strides = [1, 1]} : vector<8x512xf32> to vector<8x128xf32>
    %161 = math.tanh %160 : vector<8x128xf32>
    %162 = vector.extract_strided_slice %147 {offsets = [0, 384], sizes = [8, 128], strides = [1, 1]} : vector<8x512xf32> to vector<8x128xf32>
    %163 = arith.negf %162 : vector<8x128xf32>
    %164 = math.exp %163 : vector<8x128xf32>
    %cst_52 = arith.constant 1.000000e+00 : f32
    %165 = vector.broadcast %cst_52 : f32 to vector<8x128xf32>
    %166 = arith.addf %165, %164 : vector<8x128xf32>
    %167 = arith.divf %165, %166 : vector<8x128xf32>
    %168 = arith.mulf %159, %138 : vector<8x128xf32>
    %169 = arith.mulf %153, %161 : vector<8x128xf32>
    %170 = arith.addf %168, %169 : vector<8x128xf32>
    %171 = math.tanh %170 : vector<8x128xf32>
    %172 = arith.mulf %167, %171 : vector<8x128xf32>
    %c5_i32 = arith.constant 5 : i32
    %c0_53 = arith.constant 0 : index
    %c0_54 = arith.constant 0 : index
    %173 = vector.load %arg4[%c0_53, %c0_54] : memref<128x512xf32, #tpu.memory_space<vmem>>, vector<128x512xf32>
    %c8_i32_55 = arith.constant 8 : i32
    %174 = arith.muli %c5_i32, %c8_i32_55 : i32
    %175 = tpu.assume_multiple %174, 8 : i32
    %176 = arith.index_cast %175 : i32 to index
    %c0_56 = arith.constant 0 : index
    %177 = vector.load %arg9[%176, %c0_56] : memref<64x512xf32, #tpu.memory_space<vmem>>, vector<8x512xf32>
    %cst_57 = arith.constant dense<0.000000e+00> : vector<8x512xf32>
    %178 = tpu.matmul %172, %173, %cst_57 {dimension_numbers = #tpu.dot_dimension_numbers<[1], [0], [0], [1], [0, 0, 1, 1], [], []>} : vector<8x128xf32>, vector<128x512xf32>, vector<8x512xf32> -> vector<8x512xf32>
    %179 = arith.addf %177, %178 : vector<8x512xf32>
    %180 = vector.extract_strided_slice %179 {offsets = [0, 0], sizes = [8, 128], strides = [1, 1]} : vector<8x512xf32> to vector<8x128xf32>
    %181 = arith.negf %180 : vector<8x128xf32>
    %182 = math.exp %181 : vector<8x128xf32>
    %cst_58 = arith.constant 1.000000e+00 : f32
    %183 = vector.broadcast %cst_58 : f32 to vector<8x128xf32>
    %184 = arith.addf %183, %182 : vector<8x128xf32>
    %185 = arith.divf %183, %184 : vector<8x128xf32>
    %186 = vector.extract_strided_slice %179 {offsets = [0, 128], sizes = [8, 128], strides = [1, 1]} : vector<8x512xf32> to vector<8x128xf32>
    %187 = arith.negf %186 : vector<8x128xf32>
    %188 = math.exp %187 : vector<8x128xf32>
    %cst_59 = arith.constant 1.000000e+00 : f32
    %189 = vector.broadcast %cst_59 : f32 to vector<8x128xf32>
    %190 = arith.addf %189, %188 : vector<8x128xf32>
    %191 = arith.divf %189, %190 : vector<8x128xf32>
    %192 = vector.extract_strided_slice %179 {offsets = [0, 256], sizes = [8, 128], strides = [1, 1]} : vector<8x512xf32> to vector<8x128xf32>
    %193 = math.tanh %192 : vector<8x128xf32>
    %194 = vector.extract_strided_slice %179 {offsets = [0, 384], sizes = [8, 128], strides = [1, 1]} : vector<8x512xf32> to vector<8x128xf32>
    %195 = arith.negf %194 : vector<8x128xf32>
    %196 = math.exp %195 : vector<8x128xf32>
    %cst_60 = arith.constant 1.000000e+00 : f32
    %197 = vector.broadcast %cst_60 : f32 to vector<8x128xf32>
    %198 = arith.addf %197, %196 : vector<8x128xf32>
    %199 = arith.divf %197, %198 : vector<8x128xf32>
    %200 = arith.mulf %191, %170 : vector<8x128xf32>
    %201 = arith.mulf %185, %193 : vector<8x128xf32>
    %202 = arith.addf %200, %201 : vector<8x128xf32>
    %203 = math.tanh %202 : vector<8x128xf32>
    %204 = arith.mulf %199, %203 : vector<8x128xf32>
    %c6_i32 = arith.constant 6 : i32
    %c0_61 = arith.constant 0 : index
    %c0_62 = arith.constant 0 : index
    %205 = vector.load %arg4[%c0_61, %c0_62] : memref<128x512xf32, #tpu.memory_space<vmem>>, vector<128x512xf32>
    %c8_i32_63 = arith.constant 8 : i32
    %206 = arith.muli %c6_i32, %c8_i32_63 : i32
    %207 = tpu.assume_multiple %206, 8 : i32
    %208 = arith.index_cast %207 : i32 to index
    %c0_64 = arith.constant 0 : index
    %209 = vector.load %arg9[%208, %c0_64] : memref<64x512xf32, #tpu.memory_space<vmem>>, vector<8x512xf32>
    %cst_65 = arith.constant dense<0.000000e+00> : vector<8x512xf32>
    %210 = tpu.matmul %204, %205, %cst_65 {dimension_numbers = #tpu.dot_dimension_numbers<[1], [0], [0], [1], [0, 0, 1, 1], [], []>} : vector<8x128xf32>, vector<128x512xf32>, vector<8x512xf32> -> vector<8x512xf32>
    %211 = arith.addf %209, %210 : vector<8x512xf32>
    %212 = vector.extract_strided_slice %211 {offsets = [0, 0], sizes = [8, 128], strides = [1, 1]} : vector<8x512xf32> to vector<8x128xf32>
    %213 = arith.negf %212 : vector<8x128xf32>
    %214 = math.exp %213 : vector<8x128xf32>
    %cst_66 = arith.constant 1.000000e+00 : f32
    %215 = vector.broadcast %cst_66 : f32 to vector<8x128xf32>
    %216 = arith.addf %215, %214 : vector<8x128xf32>
    %217 = arith.divf %215, %216 : vector<8x128xf32>
    %218 = vector.extract_strided_slice %211 {offsets = [0, 128], sizes = [8, 128], strides = [1, 1]} : vector<8x512xf32> to vector<8x128xf32>
    %219 = arith.negf %218 : vector<8x128xf32>
    %220 = math.exp %219 : vector<8x128xf32>
    %cst_67 = arith.constant 1.000000e+00 : f32
    %221 = vector.broadcast %cst_67 : f32 to vector<8x128xf32>
    %222 = arith.addf %221, %220 : vector<8x128xf32>
    %223 = arith.divf %221, %222 : vector<8x128xf32>
    %224 = vector.extract_strided_slice %211 {offsets = [0, 256], sizes = [8, 128], strides = [1, 1]} : vector<8x512xf32> to vector<8x128xf32>
    %225 = math.tanh %224 : vector<8x128xf32>
    %226 = vector.extract_strided_slice %211 {offsets = [0, 384], sizes = [8, 128], strides = [1, 1]} : vector<8x512xf32> to vector<8x128xf32>
    %227 = arith.negf %226 : vector<8x128xf32>
    %228 = math.exp %227 : vector<8x128xf32>
    %cst_68 = arith.constant 1.000000e+00 : f32
    %229 = vector.broadcast %cst_68 : f32 to vector<8x128xf32>
    %230 = arith.addf %229, %228 : vector<8x128xf32>
    %231 = arith.divf %229, %230 : vector<8x128xf32>
    %232 = arith.mulf %223, %202 : vector<8x128xf32>
    %233 = arith.mulf %217, %225 : vector<8x128xf32>
    %234 = arith.addf %232, %233 : vector<8x128xf32>
    %235 = math.tanh %234 : vector<8x128xf32>
    %236 = arith.mulf %231, %235 : vector<8x128xf32>
    %c7_i32 = arith.constant 7 : i32
    %c0_69 = arith.constant 0 : index
    %c0_70 = arith.constant 0 : index
    %237 = vector.load %arg4[%c0_69, %c0_70] : memref<128x512xf32, #tpu.memory_space<vmem>>, vector<128x512xf32>
    %c8_i32_71 = arith.constant 8 : i32
    %238 = arith.muli %c7_i32, %c8_i32_71 : i32
    %239 = tpu.assume_multiple %238, 8 : i32
    %240 = arith.index_cast %239 : i32 to index
    %c0_72 = arith.constant 0 : index
    %241 = vector.load %arg9[%240, %c0_72] : memref<64x512xf32, #tpu.memory_space<vmem>>, vector<8x512xf32>
    %cst_73 = arith.constant dense<0.000000e+00> : vector<8x512xf32>
    %242 = tpu.matmul %236, %237, %cst_73 {dimension_numbers = #tpu.dot_dimension_numbers<[1], [0], [0], [1], [0, 0, 1, 1], [], []>} : vector<8x128xf32>, vector<128x512xf32>, vector<8x512xf32> -> vector<8x512xf32>
    %243 = arith.addf %241, %242 : vector<8x512xf32>
    %244 = vector.extract_strided_slice %243 {offsets = [0, 0], sizes = [8, 128], strides = [1, 1]} : vector<8x512xf32> to vector<8x128xf32>
    %245 = arith.negf %244 : vector<8x128xf32>
    %246 = math.exp %245 : vector<8x128xf32>
    %cst_74 = arith.constant 1.000000e+00 : f32
    %247 = vector.broadcast %cst_74 : f32 to vector<8x128xf32>
    %248 = arith.addf %247, %246 : vector<8x128xf32>
    %249 = arith.divf %247, %248 : vector<8x128xf32>
    %250 = vector.extract_strided_slice %243 {offsets = [0, 128], sizes = [8, 128], strides = [1, 1]} : vector<8x512xf32> to vector<8x128xf32>
    %251 = arith.negf %250 : vector<8x128xf32>
    %252 = math.exp %251 : vector<8x128xf32>
    %cst_75 = arith.constant 1.000000e+00 : f32
    %253 = vector.broadcast %cst_75 : f32 to vector<8x128xf32>
    %254 = arith.addf %253, %252 : vector<8x128xf32>
    %255 = arith.divf %253, %254 : vector<8x128xf32>
    %256 = vector.extract_strided_slice %243 {offsets = [0, 256], sizes = [8, 128], strides = [1, 1]} : vector<8x512xf32> to vector<8x128xf32>
    %257 = math.tanh %256 : vector<8x128xf32>
    %258 = vector.extract_strided_slice %243 {offsets = [0, 384], sizes = [8, 128], strides = [1, 1]} : vector<8x512xf32> to vector<8x128xf32>
    %259 = arith.negf %258 : vector<8x128xf32>
    %260 = math.exp %259 : vector<8x128xf32>
    %cst_76 = arith.constant 1.000000e+00 : f32
    %261 = vector.broadcast %cst_76 : f32 to vector<8x128xf32>
    %262 = arith.addf %261, %260 : vector<8x128xf32>
    %263 = arith.divf %261, %262 : vector<8x128xf32>
    %264 = arith.mulf %255, %234 : vector<8x128xf32>
    %265 = arith.mulf %249, %257 : vector<8x128xf32>
    %266 = arith.addf %264, %265 : vector<8x128xf32>
    %267 = math.tanh %266 : vector<8x128xf32>
    %268 = arith.mulf %263, %267 : vector<8x128xf32>
    %c8_i32_77 = arith.constant 8 : i32
    %c0_78 = arith.constant 0 : index
    %c0_79 = arith.constant 0 : index
    %269 = vector.load %arg10[%c0_78, %c0_79] : memref<8x128xf32, #tpu.memory_space<vmem>>, vector<8x128xf32>
    tpu.vector_store %arg10[%c0_78, %c0_79], %268 {strides = array<i32>} : memref<8x128xf32, #tpu.memory_space<vmem>>, vector<8x128xf32>,
    %c0_80 = arith.constant 0 : index
    %c0_81 = arith.constant 0 : index
    %270 = vector.load %arg11[%c0_80, %c0_81] : memref<8x128xf32, #tpu.memory_space<vmem>>, vector<8x128xf32>
    tpu.vector_store %arg11[%c0_80, %c0_81], %266 {strides = array<i32>} : memref<8x128xf32, #tpu.memory_space<vmem>>, vector<8x128xf32>,
    %c0_i32_82 = arith.constant 0 : i32
    %271 = arith.cmpi eq, %arg1, %c0_i32_82 : i32
    %272 = arith.extui %271 : i1 to i32
    %c0_i32_83 = arith.constant 0 : i32
    %273 = arith.cmpi ne, %272, %c0_i32_83 : i32
    scf.if %273 {
      %c0_84 = arith.constant 0 : index
      %c0_85 = arith.constant 0 : index
      %274 = vector.load %arg6[%c0_84, %c0_85] : memref<128x128xf32, #tpu.memory_space<vmem>>, vector<128x128xf32>
      %cst_86 = arith.constant dense<0.000000e+00> : vector<8x128xf32>
      %275 = tpu.matmul %268, %274, %cst_86 {dimension_numbers = #tpu.dot_dimension_numbers<[1], [0], [0], [1], [0, 0, 1, 1], [], []>} : vector<8x128xf32>, vector<128x128xf32>, vector<8x128xf32> -> vector<8x128xf32>
      %c0_87 = arith.constant 0 : index
      %c0_88 = arith.constant 0 : index
      %276 = vector.load %arg7[%c0_87, %c0_88] : memref<1x128xf32, #tpu.memory_space<vmem>>, vector<1x128xf32>
      %277 = vector.broadcast %276 : vector<1x128xf32> to vector<8x128xf32>
      %278 = arith.addf %275, %277 : vector<8x128xf32>
      %c0_89 = arith.constant 0 : index
      %c0_90 = arith.constant 0 : index
      %279 = vector.load %arg8[%c0_89, %c0_90] : memref<8x128xf32, #tpu.memory_space<vmem>>, vector<8x128xf32>
      tpu.vector_store %arg8[%c0_89, %c0_90], %278 {strides = array<i32>} : memref<8x128xf32, #tpu.memory_space<vmem>>, vector<8x128xf32>,
    } else {
    }
    return
  }
  func.func @transform_0(%arg0: i32, %arg1: i32) -> (i32, i32, i32) {
    %c0_i32 = arith.constant 0 : i32
    %c0_i32_0 = arith.constant 0 : i32
    return %arg1, %arg0, %c0_i32 : i32, i32, i32
  }
  func.func @transform_1(%arg0: i32, %arg1: i32) -> (i32, i32) {
    %c0_i32 = arith.constant 0 : i32
    %c0_i32_0 = arith.constant 0 : i32
    %c0_i32_1 = arith.constant 0 : i32
    return %c0_i32, %c0_i32_0 : i32, i32
  }
  func.func @transform_2(%arg0: i32, %arg1: i32) -> (i32, i32) {
    %c0_i32 = arith.constant 0 : i32
    %c0_i32_0 = arith.constant 0 : i32
    %c0_i32_1 = arith.constant 0 : i32
    return %c0_i32, %c0_i32_0 : i32, i32
  }
  func.func @transform_3(%arg0: i32, %arg1: i32) -> (i32, i32) {
    %c0_i32 = arith.constant 0 : i32
    %c0_i32_0 = arith.constant 0 : i32
    %c0_i32_1 = arith.constant 0 : i32
    return %c0_i32, %c0_i32_0 : i32, i32
  }
  func.func @transform_4(%arg0: i32, %arg1: i32) -> (i32, i32) {
    %c0_i32 = arith.constant 0 : i32
    %c0_i32_0 = arith.constant 0 : i32
    %c0_i32_1 = arith.constant 0 : i32
    return %c0_i32, %c0_i32_0 : i32, i32
  }
  func.func @transform_5(%arg0: i32, %arg1: i32) -> (i32, i32) {
    %c0_i32 = arith.constant 0 : i32
    %c0_i32_0 = arith.constant 0 : i32
    %c0_i32_1 = arith.constant 0 : i32
    return %c0_i32, %c0_i32_0 : i32, i32
  }
  func.func @transform_6(%arg0: i32, %arg1: i32) -> (i32, i32) {
    %c0_i32 = arith.constant 0 : i32
    %c0_i32_0 = arith.constant 0 : i32
    return %arg0, %c0_i32 : i32, i32
  }
}

</mosaic_0001>

<bundles_post_ra>
// kernel: tpu_custom_call.1
= control target key start
LH: loop header
LB: loop body
LE: loop exit
PB: predicated region body
PF: predicated region fallthrough
CT: control target
= control target key end

     0   :  { %11 = vsyncpa [#allocation6], 0  ;;  %s3596_s0 = inlined_call_operand.hbm [shape: f32[8,8,128], index: 0, kind: input, shape index: {}]   ;;  %s3597_s1 = inlined_call_operand.hbm [shape: f32[128,512], index: 1, kind: input, shape index: {}]   ;;  %s3598_s2 = inlined_call_operand.hbm [shape: f32[128,512], index: 2, kind: input, shape index: {}]   ;;  %s3599_s3 = inlined_call_operand.vmem [shape: f32[1,512], index: 3, kind: input, shape index: {}]   ;;  %s3600_s4 = inlined_call_operand.hbm [shape: f32[128,128], index: 4, kind: input, shape index: {}]   ;;  %s3601_s5 = inlined_call_operand.vmem [shape: f32[1,128], index: 5, kind: input, shape index: {}]   ;;  %s3602_s6 = inlined_call_operand.hbm [shape: f32[8,128], index: 6, kind: output, shape index: {}]  }
   0x1   :  { %12 = vsyncpa [#allocation9], 0 }
   0x2   :  { %13 = vsyncpa [#allocation12], 0 }
   0x3   :  { %14 = vsyncpa [#allocation7], 0  ;;  %s3041_s21 = smov [#allocation8]   ;;  %s2923_s25 = scalar_lea.hbm %s3597_s1, 8192 }
   0x4   :  { %s32_s22 = sshll.u32 %s3041_s21, 4  ;;  %p2924_p0 = scmp.ne.s32.totalorder %s3597_s1, %s2923_s25  ;;  %s33_s22 = int_to_ptr.vmem [resolvable:$true] %s32_s22 }
   0x5   :  { %p2927_p1 = scmp.lt.u32.totalorder %s2923_s25, %s3597_s1 }
   0x7   :  { %p2929_p2 = pnand %p2927_p1, %p2924_p0 }
   0x9   :  { %2932 = shalt.err (!%p2929_p2)
}
   0xa   :  { %s2933_s30 = scalar_lea.vmem %s33_s22, 8192  ;;  %p2938_p4 = scmp.lt.s32.totalorder %s33_s22, %s33_s22 }
   0xb   :  { %p2934_p3 = scmp.ne.s32.totalorder %s33_s22, %s2933_s30  ;;  %p2939_p5 = scmp.lt.s32.totalorder %s2933_s30, %s2933_s30 }
   0xd   :  { %p2940_p6 = por %p2939_p5, %p2938_p4 }
   0xf   :  { %p2941_p7 = pnand %p2940_p6, %p2934_p3 }
  0x11   :  { %2944 = shalt.err (!%p2941_p7)
}
  0x12   :  { %s3042_s7 = smov 512   ;;  %s3043_s8 = smov 32  }
  0x13   :  { %38 = dma.hbm_to_vmem [thread:$0]  %s3597_s1, 8192, %s33_s22, [#allocation9], %s3042_s7, %s3042_s7, %s3043_s8  }
  0x14   :  { %s3044_s11 = smov [#allocation5]   ;;  %s2945_s15 = scalar_lea.hbm %s3596_s0, 1024 }
  0x15   :  { %s20_s12 = sshll.u32 %s3044_s11, 4  ;;  %p2946_p8 = scmp.ne.s32.totalorder %s3596_s0, %s2945_s15  ;;  %s21_s12 = int_to_ptr.vmem [resolvable:$true] %s20_s12 }
  0x16   :  { %p2949_p9 = scmp.lt.u32.totalorder %s2945_s15, %s3596_s0 }
  0x18   :  { %p2951_p10 = pnand %p2949_p9, %p2946_p8 }
  0x1a   :  { %2954 = shalt.err (!%p2951_p10)
}
  0x1b   :  { %s2955_s20 = scalar_lea.vmem %s21_s12, 1024  ;;  %p2960_p12 = scmp.lt.s32.totalorder %s21_s12, %s21_s12 }
  0x1c   :  { %p2956_p11 = scmp.ne.s32.totalorder %s21_s12, %s2955_s20  ;;  %p2961_p13 = scmp.lt.s32.totalorder %s2955_s20, %s2955_s20 }
  0x1e   :  { %p2962_p0 = por %p2961_p13, %p2960_p12 }
  0x20   :  { %p2963_p1 = pnand %p2962_p0, %p2956_p11 }
  0x22   :  { %2966 = shalt.err (!%p2963_p1)
}
  0x23   :  { %s3045_s1 = smov 128   ;;  %s3046_s21 = smov 8  }
  0x24   :  { %26 = dma.hbm_to_vmem [thread:$0]  %s3596_s0, 1024, %s21_s12, [#allocation6], %s3045_s1, %s3045_s1, %s3046_s21  }
  0x25   :  { %s3047_s24 = smov [#allocation10]   ;;  %s3048_s26 = smov [#allocation11]  }
  0x26   :  { %s44_s25 = sshll.u32 %s3047_s24, 4  ;;  %s58_s27 = sshll.u32 %s3048_s26, 4  ;;  %s45_s25 = int_to_ptr.vmem [resolvable:$true] %s44_s25  ;;  %s3118_s27 = int_to_ptr.vmem [resolvable:$true] %s58_s27 }
  0x27   :  { %s2967_s30 = scalar_lea.hbm %s3598_s2, 8192 }
  0x28   :  { %p2968_p2 = scmp.ne.s32.totalorder %s3598_s2, %s2967_s30  ;;  %p2971_p3 = scmp.lt.u32.totalorder %s2967_s30, %s3598_s2 }
  0x2a   :  { %p2973_p4 = pnand %p2971_p3, %p2968_p2 }
  0x2c   :  { %2976 = shalt.err (!%p2973_p4)
}
  0x2d   :  { %s2977_s0 = scalar_lea.vmem %s45_s25, 8192  ;;  %p2982_p6 = scmp.lt.s32.totalorder %s45_s25, %s45_s25 }
  0x2e   :  { %p2978_p5 = scmp.ne.s32.totalorder %s45_s25, %s2977_s0  ;;  %p2983_p7 = scmp.lt.s32.totalorder %s2977_s0, %s2977_s0 }
  0x30   :  { %p2984_p8 = por %p2983_p7, %p2982_p6 }
  0x32   :  { %p2985_p9 = pnand %p2984_p8, %p2978_p5 }
  0x34   :  { %2988 = shalt.err (!%p2985_p9)
}
  0x35   :  { %50 = dma.hbm_to_vmem [thread:$0]  %s3598_s2, 8192, %s45_s25, [#allocation9], %s3042_s7, %s3042_s7, %s3043_s8  }
  0x36   :  { %s2989_s17 = scalar_lea.hbm %s3600_s4, 2048 }
  0x37   :  { %p2990_p10 = scmp.ne.s32.totalorder %s3600_s4, %s2989_s17  ;;  %p2993_p11 = scmp.lt.u32.totalorder %s2989_s17, %s3600_s4 }
  0x39   :  { %p2995_p12 = pnand %p2993_p11, %p2990_p10 }
  0x3b   :  { %2998 = shalt.err (!%p2995_p12)
}
  0x3c   :  { %s2999_s23 = scalar_lea.vmem %s3118_s27, 2048  ;;  %p3004_p0 = scmp.lt.s32.totalorder %s3118_s27, %s3118_s27 }
  0x3d   :  { %p3000_p13 = scmp.ne.s32.totalorder %s3118_s27, %s2999_s23  ;;  %p3005_p1 = scmp.lt.s32.totalorder %s2999_s23, %s2999_s23 }
  0x3f   :  { %p3006_p2 = por %p3005_p1, %p3004_p0 }
  0x41   :  { %p3007_p3 = pnand %p3006_p2, %p3000_p13 }
  0x43   :  { %3010 = shalt.err (!%p3007_p3)
}
  0x44   :  { %64 = dma.hbm_to_vmem [thread:$0]  %s3600_s4, 2048, %s3118_s27, [#allocation12], %s3045_s1, %s3045_s1, %s3046_s21  }
  0x45   :  { %3033 = dma.done.wait [#allocation6], 1024  }
  0x46   :  { %3034 = vsyncadd [#allocation6], 4294966272 }
  0x47   :  { %3035 = dma.done.wait [#allocation9], 16384  }
  0x48   :  { %3036 = vsyncadd [#allocation9], 4294950912 }
  0x49   :  { %3037 = dma.done.wait [#allocation12], 2048  }
  0x4a   :  { %3038 = vsyncadd [#allocation12], 4294965248  ;;  %v3049_v0 = vmov 0.0   ;;  %v94_v1 = vld [vmem:[#allocation8 + $0x8] sm:$0xff]  ;;  %v96_v3 = vld [vmem:[#allocation8 + $0x18] sm:$0xff]  ;;  %vm3051_vm0 = vmmov 0  }
  0x4b   :  { %243 = vmatprep.mubr.f32.mxu0 %v3049_v0  ;;  %356 = vmatprep.mubr.f32.mxu1 %v3049_v0  ;;  %v98_v2 = vld [vmem:[#allocation8 + $0x28] sm:$0xff]  ;;  %v100_v5 = vld [vmem:[#allocation8 + $0x38] sm:$0xff]  ;;  %v93_v6 = vld [vmem:[#allocation8] sm:$0xff]  ;;  %s3052_s21 = smov [#allocation13]  }
  0x4c   :  { %v2119_v4 = vpack.c.bf16 %v98_v2, %v94_v1  ;;  %v97_v7 = vld [vmem:[#allocation8 + $0x20] sm:$0xff]  ;;  %v2151_v8 = vpack.c.bf16 %v100_v5, %v96_v3  ;;  %v95_v10 = vld [vmem:[#allocation8 + $0x10] sm:$0xff]  ;;  %v102_v12 = vld [vmem:[#allocation8 + $0x48] sm:$0xff]  ;;  %s2024_s24 = sshll.u32 %s3052_s21, 4  ;;  %s2025_s24 = int_to_ptr.vmem [resolvable:$true] %s2024_s24 }
  0x4d   :  { %v2121_v9 = vpack.c.bf16 %v97_v7, %v93_v6  ;;  %v99_v11 = vld [vmem:[#allocation8 + $0x30] sm:$0xff]  ;;  %v106_v14 = vld [vmem:[#allocation8 + $0x68] sm:$0xff]  ;;  %v104_v15 = vld [vmem:[#allocation8 + $0x58] sm:$0xff]  ;;  %s3011_s25 = scalar_lea.vmem %s2025_s24, 128  ;;  %p3016_p5 = scmp.lt.s32.totalorder %s2025_s24, %s2025_s24 }
  0x4e   :  { %2120 = vmatprep.subr.bf16.mxu0 %v2119_v4  ;;  %v2153_v13 = vpack.c.bf16 %v99_v11, %v95_v10  ;;  %v108_v16 = vld [vmem:[#allocation8 + $0x78] sm:$0xff]  ;;  %2152 = vmatprep.subr.bf16.mxu1 %v2151_v8  ;;  %v2123_v17 = vpack.c.bf16 %v106_v14, %v102_v12  ;;  %v101_v19 = vld [vmem:[#allocation8 + $0x40] sm:$0xff]  ;;  %v103_v21 = vld [vmem:[#allocation8 + $0x50] sm:$0xff]  ;;  %p3012_p4 = scmp.ne.s32.totalorder %s2025_s24, %s3011_s25  ;;  %p3017_p6 = scmp.lt.s32.totalorder %s3011_s25, %s3011_s25 }
  0x4f   :  { %2122 = vmatpush1.bf16.msra.mxu0 %v2121_v9  ;;  %v2155_v18 = vpack.c.bf16 %v108_v16, %v104_v15  ;;  %v105_v20 = vld [vmem:[#allocation8 + $0x60] sm:$0xff]  ;;  %v107_v23 = vld [vmem:[#allocation8 + $0x70] sm:$0xff]  ;;  %v110_v24 = vld [vmem:[#allocation8 + $0x88] sm:$0xff] }
  0x50   :  { %2154 = vmatpush1.bf16.msra.mxu1 %v2153_v13  ;;  %v2125_v22 = vpack.c.bf16 %v105_v20, %v101_v19  ;;  %v114_v25 = vld [vmem:[#allocation8 + $0xa8] sm:$0xff]  ;;  %2124 = vmatprep.subr.bf16.mxu0 %v2123_v17  ;;  %v2157_v26 = vpack.c.bf16 %v107_v23, %v103_v21  ;;  %v112_v28 = vld [vmem:[#allocation8 + $0x98] sm:$0xff]  ;;  %v109_v30 = vld [vmem:[#allocation8 + $0x80] sm:$0xff]  ;;  %p3018_p7 = por %p3017_p6, %p3016_p5 }
  0x51   :  { %2156 = vmatprep.subr.bf16.mxu1 %v2155_v18  ;;  %v2127_v27 = vpack.c.bf16 %v114_v25, %v110_v24  ;;  %v116_v29 = vld [vmem:[#allocation8 + $0xb8] sm:$0xff]  ;;  %v113_v32 = vld [vmem:[#allocation8 + $0xa0] sm:$0xff]  ;;  %v111_v33 = vld [vmem:[#allocation8 + $0x90] sm:$0xff] }
  0x52   :  { %v2159_v31 = vpack.c.bf16 %v116_v29, %v112_v28  ;;  %v115_v34 = vld [vmem:[#allocation8 + $0xb0] sm:$0xff]  ;;  %v2129_v35 = vpack.c.bf16 %v113_v32, %v109_v30  ;;  %v118_v36 = vld [vmem:[#allocation8 + $0xc8] sm:$0xff]  ;;  %v120_v38 = vld [vmem:[#allocation8 + $0xd8] sm:$0xff]  ;;  %p3019_p8 = pnand %p3018_p7, %p3012_p4 }
  0x53   :  { %2126 = vmatpush1.bf16.msra.mxu0 %v2125_v22  ;;  %v122_v37 = vld [vmem:[#allocation8 + $0xe8] sm:$0xff]  ;;  %v2161_v39 = vpack.c.bf16 %v115_v34, %v111_v33  ;;  %v124_v41 = vld [vmem:[#allocation8 + $0xf8] sm:$0xff]  ;;  %v117_v42 = vld [vmem:[#allocation8 + $0xc0] sm:$0xff] }
  0x54   :  { %2158 = vmatpush1.bf16.msra.mxu1 %v2157_v26  ;;  %2128 = vmatprep.subr.bf16.mxu0 %v2127_v27  ;;  %v2131_v40 = vpack.c.bf16 %v122_v37, %v118_v36  ;;  %v121_v43 = vld [vmem:[#allocation8 + $0xe0] sm:$0xff]  ;;  %v2163_v44 = vpack.c.bf16 %v124_v41, %v120_v38  ;;  %v119_v45 = vld [vmem:[#allocation8 + $0xd0] sm:$0xff]  ;;  %v126_v47 = vld [vmem:[#allocation8 + $0x108] sm:$0xff] }
  0x55   :  { %2160 = vmatprep.subr.bf16.mxu1 %v2159_v31  ;;  %v123_v46 = vld [vmem:[#allocation8 + $0xf0] sm:$0xff]  ;;  %v130_v48 = vld [vmem:[#allocation8 + $0x128] sm:$0xff]  ;;  %v128_v49 = vld [vmem:[#allocation8 + $0x118] sm:$0xff]  ;;  %v2133_v51 = vpack.c.bf16 %v121_v43, %v117_v42 }
  0x56   :  { %v132_v50 = vld [vmem:[#allocation8 + $0x138] sm:$0xff]  ;;  %v2165_v52 = vpack.c.bf16 %v123_v46, %v119_v45  ;;  %v2135_v53 = vpack.c.bf16 %v130_v48, %v126_v47  ;;  %v125_v54 = vld [vmem:[#allocation8 + $0x100] sm:$0xff]  ;;  %v127_v56 = vld [vmem:[#allocation8 + $0x110] sm:$0xff] }
  0x57   :  { %2130 = vmatpush1.bf16.msra.mxu0 %v2129_v35  ;;  %v129_v55 = vld [vmem:[#allocation8 + $0x120] sm:$0xff]  ;;  %v2167_v57 = vpack.c.bf16 %v132_v50, %v128_v49  ;;  %v131_v58 = vld [vmem:[#allocation8 + $0x130] sm:$0xff]  ;;  %v134_v59 = vld [vmem:[#allocation8 + $0x148] sm:$0xff] }
  0x58   :  { %2162 = vmatpush1.bf16.msra.mxu1 %v2161_v39  ;;  %2132 = vmatprep.subr.bf16.mxu0 %v2131_v40  ;;  %v138_v60 = vld [vmem:[#allocation8 + $0x168] sm:$0xff]  ;;  %v136_v61 = vld [vmem:[#allocation8 + $0x158] sm:$0xff]  ;;  %v2137_v63 = vpack.c.bf16 %v129_v55, %v125_v54  ;;  %v2169_v1 = vpack.c.bf16 %v131_v58, %v127_v56  ;;  %v133_v3 = vld [vmem:[#allocation8 + $0x140] sm:$0xff] }
  0x59   :  { %2164 = vmatprep.subr.bf16.mxu1 %v2163_v44  ;;  %v140_v62 = vld [vmem:[#allocation8 + $0x178] sm:$0xff]  ;;  %v2139_v2 = vpack.c.bf16 %v138_v60, %v134_v59  ;;  %v137_v4 = vld [vmem:[#allocation8 + $0x160] sm:$0xff]  ;;  %v135_v5 = vld [vmem:[#allocation8 + $0x150] sm:$0xff] }
  0x5a   :  { %v2171_v6 = vpack.c.bf16 %v140_v62, %v136_v61  ;;  %v139_v7 = vld [vmem:[#allocation8 + $0x170] sm:$0xff]  ;;  %v142_v8 = vld [vmem:[#allocation8 + $0x188] sm:$0xff]  ;;  %v144_v10 = vld [vmem:[#allocation8 + $0x198] sm:$0xff]  ;;  %v2141_v12 = vpack.c.bf16 %v137_v4, %v133_v3 }
  0x5b   :  { %2134 = vmatpush1.bf16.msra.mxu0 %v2133_v51  ;;  %v146_v9 = vld [vmem:[#allocation8 + $0x1a8] sm:$0xff]  ;;  %v148_v11 = vld [vmem:[#allocation8 + $0x1b8] sm:$0xff]  ;;  %v2173_v13 = vpack.c.bf16 %v139_v7, %v135_v5  ;;  %v141_v15 = vld [vmem:[#allocation8 + $0x180] sm:$0xff] }
  0x5c   :  { %2166 = vmatpush1.bf16.msra.mxu1 %v2165_v52  ;;  %2136 = vmatprep.subr.bf16.mxu0 %v2135_v53  ;;  %v2143_v14 = vpack.c.bf16 %v146_v9, %v142_v8  ;;  %v145_v16 = vld [vmem:[#allocation8 + $0x1a0] sm:$0xff]  ;;  %v143_v17 = vld [vmem:[#allocation8 + $0x190] sm:$0xff]  ;;  %v2175_v18 = vpack.c.bf16 %v148_v11, %v144_v10  ;;  %v150_v20 = vld [vmem:[#allocation8 + $0x1c8] sm:$0xff] }
  0x5d   :  { %2168 = vmatprep.subr.bf16.mxu1 %v2167_v57  ;;  %v147_v19 = vld [vmem:[#allocation8 + $0x1b0] sm:$0xff]  ;;  %v154_v21 = vld [vmem:[#allocation8 + $0x1e8] sm:$0xff]  ;;  %v152_v22 = vld [vmem:[#allocation8 + $0x1d8] sm:$0xff]  ;;  %v2145_v24 = vpack.c.bf16 %v145_v16, %v141_v15 }
  0x5e   :  { %v156_v23 = vld [vmem:[#allocation8 + $0x1f8] sm:$0xff]  ;;  %v2177_v25 = vpack.c.bf16 %v147_v19, %v143_v17  ;;  %v2147_v26 = vpack.c.bf16 %v154_v21, %v150_v20  ;;  %v149_v27 = vld [vmem:[#allocation8 + $0x1c0] sm:$0xff]  ;;  %v151_v29 = vld [vmem:[#allocation8 + $0x1d0] sm:$0xff] }
  0x5f   :  { %2138 = vmatpush1.bf16.msra.mxu0 %v2137_v63  ;;  %v153_v28 = vld [vmem:[#allocation8 + $0x1e0] sm:$0xff]  ;;  %v2179_v30 = vpack.c.bf16 %v156_v23, %v152_v22  ;;  %v155_v31 = vld [vmem:[#allocation8 + $0x1f0] sm:$0xff]  ;;  %v440_v32 = vld [vmem:[#allocation10 + $0x8] sm:$0xff] }
  0x60   :  { %2170 = vmatpush1.bf16.msra.mxu1 %v2169_v1  ;;  %2140 = vmatprep.subr.bf16.mxu0 %v2139_v2  ;;  %v444_v33 = vld [vmem:[#allocation10 + $0x28] sm:$0xff]  ;;  %v442_v34 = vld [vmem:[#allocation10 + $0x18] sm:$0xff]  ;;  %v2149_v36 = vpack.c.bf16 %v153_v28, %v149_v27  ;;  %v2181_v37 = vpack.c.bf16 %v155_v31, %v151_v29  ;;  %v439_v39 = vld [vmem:[#allocation10] sm:$0xff] }
  0x61   :  { %2172 = vmatprep.subr.bf16.mxu1 %v2171_v6  ;;  %v446_v35 = vld [vmem:[#allocation10 + $0x38] sm:$0xff]  ;;  %v3157_v38 = vpack.c.bf16 %v444_v33, %v440_v32  ;;  %v443_v40 = vld [vmem:[#allocation10 + $0x20] sm:$0xff]  ;;  %v441_v42 = vld [vmem:[#allocation10 + $0x10] sm:$0xff] }
  0x62   :  { %v3159_v41 = vpack.c.bf16 %v446_v35, %v442_v34  ;;  %v445_v43 = vld [vmem:[#allocation10 + $0x30] sm:$0xff]  ;;  %v448_v44 = vld [vmem:[#allocation10 + $0x48] sm:$0xff]  ;;  %v85_v46 = vld [vmem:[#allocation5] sm:$0xff]  ;;  %v3161_v47 = vpack.c.bf16 %v443_v40, %v439_v39 }
  0x63   :  { %2142 = vmatpush1.bf16.msra.mxu0 %v2141_v12  ;;  %v452_v45 = vld [vmem:[#allocation10 + $0x68] sm:$0xff]  ;;  %v450_v48 = vld [vmem:[#allocation10 + $0x58] sm:$0xff]  ;;  %v3164_v50 = vpack.c.bf16 %v445_v43, %v441_v42  ;;  %v447_v51 = vld [vmem:[#allocation10 + $0x40] sm:$0xff] }
  0x64   :  { %2174 = vmatpush1.bf16.msra.mxu1 %v2173_v13  ;;  %2144 = vmatprep.subr.bf16.mxu0 %v2143_v14  ;;  %v454_v49 = vld [vmem:[#allocation10 + $0x78] sm:$0xff]  ;;  %v451_v52 = vld [vmem:[#allocation10 + $0x60] sm:$0xff]  ;;  %v3167_v53 = vpack.c.bf16 %v452_v45, %v448_v44  ;;  %v449_v54 = vld [vmem:[#allocation10 + $0x50] sm:$0xff] }
  0x65   :  { %2176 = vmatprep.subr.bf16.mxu1 %v2175_v18  ;;  %v453_v55 = vld [vmem:[#allocation10 + $0x70] sm:$0xff]  ;;  %v3169_v56 = vpack.c.bf16 %v454_v49, %v450_v48  ;;  %v456_v57 = vld [vmem:[#allocation10 + $0x88] sm:$0xff]  ;;  %v3172_v60 = vpack.c.bf16 %v451_v52, %v447_v51  ;;  %v458_v61 = vld [vmem:[#allocation10 + $0x98] sm:$0xff] }
  0x66   :  { %v460_v58 = vld [vmem:[#allocation10 + $0xa8] sm:$0xff]  ;;  %v462_v62 = vld [vmem:[#allocation10 + $0xb8] sm:$0xff]  ;;  %v3176_v63 = vpack.c.bf16 %v453_v55, %v449_v54  ;;  %v455_v1 = vld [vmem:[#allocation10 + $0x80] sm:$0xff] }
  0x67   :  { %2146 = vmatpush1.bf16.msra.mxu0 %v2145_v24  ;;  %v86_v59 = vld [vmem:[#allocation5 + $0x8] sm:$0xff]  ;;  %v459_v2 = vld [vmem:[#allocation10 + $0xa0] sm:$0xff]  ;;  %v3180_v3 = vpack.c.bf16 %v460_v58, %v456_v57  ;;  %v457_v4 = vld [vmem:[#allocation10 + $0x90] sm:$0xff]  ;;  %v3183_v6 = vpack.c.bf16 %v462_v62, %v458_v61 }
  0x68   :  { %2178 = vmatpush1.bf16.msra.mxu1 %v2177_v25  ;;  %2148 = vmatprep.subr.bf16.mxu0 %v2147_v26  ;;  %v461_v5 = vld [vmem:[#allocation10 + $0xb0] sm:$0xff]  ;;  %v464_v7 = vld [vmem:[#allocation10 + $0xc8] sm:$0xff]  ;;  %v3186_v10 = vpack.c.bf16 %v459_v2, %v455_v1  ;;  %v466_v11 = vld [vmem:[#allocation10 + $0xd8] sm:$0xff] }
  0x69   :  { %2180 = vmatprep.subr.bf16.mxu1 %v2179_v30  ;;  %v468_v8 = vld [vmem:[#allocation10 + $0xe8] sm:$0xff]  ;;  %v87_v9 = vld [vmem:[#allocation5 + $0x10] sm:$0xff]  ;;  %v470_v12 = vld [vmem:[#allocation10 + $0xf8] sm:$0xff]  ;;  %v3190_v13 = vpack.c.bf16 %v461_v5, %v457_v4 }
  0x6a   :  { %v463_v14 = vld [vmem:[#allocation10 + $0xc0] sm:$0xff]  ;;  %v3194_v16 = vpack.c.bf16 %v468_v8, %v464_v7  ;;  %v465_v17 = vld [vmem:[#allocation10 + $0xd0] sm:$0xff]  ;;  %v3197_v19 = vpack.c.bf16 %v470_v12, %v466_v11  ;;  %v472_v20 = vld [vmem:[#allocation10 + $0x108] sm:$0xff] }
  0x6b   :  { %2150 = vmatpush1.bf16.msra.mxu0 %v2149_v36  ;;  %v467_v15 = vld [vmem:[#allocation10 + $0xe0] sm:$0xff]  ;;  %v469_v18 = vld [vmem:[#allocation10 + $0xf0] sm:$0xff]  ;;  %v476_v21 = vld [vmem:[#allocation10 + $0x128] sm:$0xff] }
  0x6c   :  { %2182 = vmatpush1.bf16.msra.mxu1 %v2181_v37  ;;  %2184 = vmatprep.subr.bf16.mxu0 %v3157_v38  ;;  %v88_v22 = vld [vmem:[#allocation5 + $0x18] sm:$0xff]  ;;  %v3200_v23 = vpack.c.bf16 %v467_v15, %v463_v14  ;;  %v3204_v26 = vpack.c.bf16 %v469_v18, %v465_v17  ;;  %v471_v27 = vld [vmem:[#allocation10 + $0x100] sm:$0xff]  ;;  %v3208_v29 = vpack.c.bf16 %v476_v21, %v472_v20  ;;  %v473_v30 = vld [vmem:[#allocation10 + $0x110] sm:$0xff] }
  0x6d   :  { %2216 = vmatprep.subr.bf16.mxu1 %v3159_v41  ;;  %v474_v24 = vld [vmem:[#allocation10 + $0x118] sm:$0xff]  ;;  %v475_v28 = vld [vmem:[#allocation10 + $0x120] sm:$0xff]  ;;  %v477_v31 = vld [vmem:[#allocation10 + $0x130] sm:$0xff] }
  0x6e   :  { %244 = vmatmul.mubr.f32.vlgmr.msra.gmra.mrb[0].mxu0 %v85_v46  ;;  %v478_v25 = vld [vmem:[#allocation10 + $0x138] sm:$0xff]  ;;  %v480_v33 = vld [vmem:[#allocation10 + $0x148] sm:$0xff]  ;;  %v89_v35 = vld [vmem:[#allocation5 + $0x20] sm:$0xff]  ;;  %v3214_v36 = vpack.c.bf16 %v475_v28, %v471_v27  ;;  %v3218_v40 = vpack.c.bf16 %v477_v31, %v473_v30  ;;  %v159_v28 = vlaneseq }
  0x6f   :  { %357 = vmatmul.mubr.f32.vlgmr.msra.gmra.mrb[0].mxu1 %v85_v46  ;;  %2186 = vmatpush1.bf16.msra.mxu0 %v3161_v47  ;;  %v3211_v32 = vpack.c.bf16 %v478_v25, %v474_v24  ;;  %v484_v34 = vld [vmem:[#allocation10 + $0x168] sm:$0xff]  ;;  %v482_v37 = vld [vmem:[#allocation10 + $0x158] sm:$0xff]  ;;  %v479_v42 = vld [vmem:[#allocation10 + $0x140] sm:$0xff] }
  0x70   :  { %2218 = vmatpush1.bf16.msra.mxu1 %v3164_v50  ;;  %249 = vmatprep.mubr.f32.mxu0 %v3049_v0  ;;  %v486_v39 = vld [vmem:[#allocation10 + $0x178] sm:$0xff]  ;;  %v483_v43 = vld [vmem:[#allocation10 + $0x160] sm:$0xff]  ;;  %v3222_v44 = vpack.c.bf16 %v484_v34, %v480_v33  ;;  %v481_v45 = vld [vmem:[#allocation10 + $0x150] sm:$0xff]  ;;  %v160_v30 = vshrl.u32 %v159_v28, 7 }
  0x71   :  { %362 = vmatprep.mubr.f32.mxu1 %v3049_v0  ;;  %2188 = vmatprep.subr.bf16.mxu0 %v3167_v53  ;;  %v485_v46 = vld [vmem:[#allocation10 + $0x170] sm:$0xff]  ;;  %v3225_v48 = vpack.c.bf16 %v486_v39, %v482_v37  ;;  %v488_v49 = vld [vmem:[#allocation10 + $0x188] sm:$0xff]  ;;  %v3228_v54 = vpack.c.bf16 %v483_v43, %v479_v42  ;;  %v490_v55 = vld [vmem:[#allocation10 + $0x198] sm:$0xff] }
  0x72   :  { %250 = vmatmul.mubr.f32.gmra.mrb[2].mxu0 %v86_v59  ;;  %2220 = vmatprep.subr.bf16.mxu1 %v3169_v56  ;;  %v492_v51 = vld [vmem:[#allocation10 + $0x1a8] sm:$0xff]  ;;  %v494_v57 = vld [vmem:[#allocation10 + $0x1b8] sm:$0xff]  ;;  %v3232_v58 = vpack.c.bf16 %v485_v46, %v481_v45  ;;  %v491_v61 = vld [vmem:[#allocation10 + $0x1a0] sm:$0xff]  ;;  %v161_v31 = vsub.s32 0, %v160_v30  ;;  %v165_v34 = vsub.s32 1, %v160_v30  ;;  %v173_v42 = vsub.s32 3, %v160_v30 }
  0x73   :  { %363 = vmatmul.mubr.f32.gmra.mrb[2].mxu1 %v86_v59  ;;  %2190 = vmatpush1.bf16.msra.mxu0 %v3172_v60  ;;  %v90_v52 = vld [vmem:[#allocation5 + $0x28] sm:$0xff]  ;;  %v487_v59 = vld [vmem:[#allocation10 + $0x180] sm:$0xff]  ;;  %v3236_v62 = vpack.c.bf16 %v492_v51, %v488_v49  ;;  %v489_v1 = vld [vmem:[#allocation10 + $0x190] sm:$0xff]  ;;  %v3239_v4 = vpack.c.bf16 %v494_v57, %v490_v55 }
  0x74   :  { %2222 = vmatpush1.bf16.msra.mxu1 %v3176_v63  ;;  %255 = vmatprep.mubr.f32.mxu0 %v3049_v0  ;;  %v493_v2 = vld [vmem:[#allocation10 + $0x1b0] sm:$0xff]  ;;  %v496_v5 = vld [vmem:[#allocation10 + $0x1c8] sm:$0xff]  ;;  %v498_v11 = vld [vmem:[#allocation10 + $0x1d8] sm:$0xff] }
  0x75   :  { %368 = vmatprep.mubr.f32.mxu1 %v3049_v0  ;;  %2192 = vmatprep.subr.bf16.mxu0 %v3180_v3  ;;  %v500_v7 = vld [vmem:[#allocation10 + $0x1e8] sm:$0xff]  ;;  %v91_v8 = vld [vmem:[#allocation5 + $0x30] sm:$0xff]  ;;  %v502_v12 = vld [vmem:[#allocation10 + $0x1f8] sm:$0xff]  ;;  %v3246_v14 = vpack.c.bf16 %v493_v2, %v489_v1 }
  0x76   :  { %256 = vmatmul.mubr.f32.gmra.mrb[4].mxu0 %v87_v9  ;;  %2224 = vmatprep.subr.bf16.mxu1 %v3183_v6  ;;  %v495_v15 = vld [vmem:[#allocation10 + $0x1c0] sm:$0xff]  ;;  %v3250_v18 = vpack.c.bf16 %v500_v7, %v496_v5  ;;  %v497_v20 = vld [vmem:[#allocation10 + $0x1d0] sm:$0xff]  ;;  %v92_v24 = vld [vmem:[#allocation5 + $0x38] sm:$0xff] }
  0x77   :  { %369 = vmatmul.mubr.f32.gmra.mrb[4].mxu1 %v87_v9  ;;  %2194 = vmatpush1.bf16.msra.mxu0 %v3186_v10  ;;  %v3242_v9 = vpack.c.bf16 %v491_v61, %v487_v59  ;;  %v499_v17 = vld [vmem:[#allocation10 + $0x1e0] sm:$0xff]  ;;  %v501_v21 = vld [vmem:[#allocation10 + $0x1f0] sm:$0xff]  ;;  %v169_v59 = vsub.s32 2, %v160_v30 }
  0x78   :  { %2226 = vmatpush1.bf16.msra.mxu1 %v3190_v13  ;;  %261 = vmatprep.mubr.f32.mxu0 %v3049_v0  ;;  %v3256_v25 = vpack.c.bf16 %v499_v17, %v495_v15  ;;  %v3260_v27 = vpack.c.bf16 %v501_v21, %v497_v20  ;;  %v157_v33 = vld [vmem:[%s3599_s3] sm:$0xf] }
  0x79   :  { %374 = vmatprep.mubr.f32.mxu1 %v3049_v0  ;;  %2196 = vmatprep.subr.bf16.mxu0 %v3194_v16  ;;  %v3312_v37 = vrot.slane %v157_v33, %v165_v34  ;;  %v3316_v57 = vrot.slane %v157_v33, %v173_v42  ;;  %v3319_v1 = vrot.slane %v157_v33, %v169_v59 }
  0x7a   :  { %262 = vmatmul.mubr.f32.gmra.mrb[6].mxu0 %v88_v22  ;;  %2228 = vmatprep.subr.bf16.mxu1 %v3197_v19 }
  0x7b   :  { %375 = vmatmul.mubr.f32.gmra.mrb[6].mxu1 %v88_v22  ;;  %2198 = vmatpush1.bf16.msra.mxu0 %v3200_v23  ;;  %v3253_v22 = vpack.c.bf16 %v502_v12, %v498_v11 }
  0x7c   :  { %2230 = vmatpush1.bf16.msra.mxu1 %v3204_v26  ;;  %267 = vmatprep.mubr.f32.mxu0 %v3049_v0 }
  0x7d   :  { %380 = vmatprep.mubr.f32.mxu1 %v3049_v0  ;;  %2200 = vmatprep.subr.bf16.mxu0 %v3208_v29 }
  0x7e   :  { %268 = vmatmul.mubr.f32.gmra.mrb[8].mxu0 %v89_v35  ;;  %2232 = vmatprep.subr.bf16.mxu1 %v3211_v32 }
  0x7f   :  { %381 = vmatmul.mubr.f32.gmra.mrb[8].mxu1 %v89_v35  ;;  %2202 = vmatpush1.bf16.msra.mxu0 %v3214_v36  ;;  %v3310_v35 = vrot.slane %v157_v33, %v161_v31 }
  0x80   :  { %2234 = vmatpush1.bf16.msra.mxu1 %v3218_v40  ;;  %273 = vmatprep.mubr.f32.mxu0 %v3049_v0 }
  0x81   :  { %386 = vmatprep.mubr.f32.mxu1 %v3049_v0  ;;  %2204 = vmatprep.subr.bf16.mxu0 %v3222_v44 }
  0x82   :  { %274 = vmatmul.mubr.f32.gmra.mrb[10].mxu0 %v90_v52  ;;  %2236 = vmatprep.subr.bf16.mxu1 %v3225_v48 }
  0x83   :  { %387 = vmatmul.mubr.f32.gmra.mrb[10].mxu1 %v90_v52  ;;  %2206 = vmatpush1.bf16.msra.mxu0 %v3228_v54 }
  0x84   :  { %2238 = vmatpush1.bf16.msra.mxu1 %v3232_v58  ;;  %279 = vmatprep.mubr.f32.mxu0 %v3049_v0 }
  0x85   :  { %392 = vmatprep.mubr.f32.mxu1 %v3049_v0  ;;  %2208 = vmatprep.subr.bf16.mxu0 %v3236_v62 }
  0x86   :  { %280 = vmatmul.mubr.f32.gmra.mrb[12].mxu0 %v91_v8  ;;  %2240 = vmatprep.subr.bf16.mxu1 %v3239_v4 }
  0x87   :  { %393 = vmatmul.mubr.f32.gmra.mrb[12].mxu1 %v91_v8  ;;  %2210 = vmatpush1.bf16.msra.mxu0 %v3242_v9 }
  0x88   :  { %2242 = vmatpush1.bf16.msra.mxu1 %v3246_v14  ;;  %285 = vmatprep.mubr.f32.mxu0 %v3049_v0 }
  0x89   :  { %398 = vmatprep.mubr.f32.mxu1 %v3049_v0  ;;  %2212 = vmatprep.subr.bf16.mxu0 %v3250_v18 }
  0x8a   :  { %286 = vmatmul.mubr.f32.gmra.mrb[14].mxu0 %v92_v24  ;;  %2244 = vmatprep.subr.bf16.mxu1 %v3253_v22 }
  0x8b   :  { %399 = vmatmul.mubr.f32.gmra.mrb[14].mxu1 %v92_v24  ;;  %2214 = vmatpush1.bf16.msra.mxu0 %v3256_v25 }
  0x8c   :  { %2246 = vmatpush1.bf16.msra.mxu1 %v3260_v27  ;;  %574 = vmatprep.mubr.f32.mxu0 %v3049_v0 }
  0x8d   :  { %645 = vmatprep.mubr.f32.mxu1 %v3049_v0  ;;  %2248 = vmatprep.subr.bf16.mxu0 %v3157_v38 }
  0x8e   :  { %575 = vmatmul.mubr.f32.vlgmr.msra.gmra.mrb[0].mxu0 %v3049_v0  ;;  %2280 = vmatprep.subr.bf16.mxu1 %v3159_v41 }
  0x8f   :  { %646 = vmatmul.mubr.f32.vlgmr.msra.gmra.mrb[0].mxu1 %v3049_v0  ;;  %2250 = vmatpush1.bf16.msra.mxu0 %v3161_v47 }
  0x90   :  { %2282 = vmatpush1.bf16.msra.mxu1 %v3164_v50  ;;  %2252 = vmatprep.subr.bf16.mxu0 %v3167_v53 }
  0x91   :  { %2284 = vmatprep.subr.bf16.mxu1 %v3169_v56  ;;  %751 = vmatprep.mubr.f32.mxu0 %v3049_v0 }
  0x92   :  { %822 = vmatprep.mubr.f32.mxu1 %v3049_v0 }
  0x93   :  { %2254 = vmatpush1.bf16.msra.mxu0 %v3172_v60 }
  0x94   :  { %2286 = vmatpush1.bf16.msra.mxu1 %v3176_v63  ;;  %2256 = vmatprep.subr.bf16.mxu0 %v3180_v3 }
  0x95   :  { %2288 = vmatprep.subr.bf16.mxu1 %v3183_v6 }
  0x97   :  { %2258 = vmatpush1.bf16.msra.mxu0 %v3186_v10 }
  0x98   :  { %2290 = vmatpush1.bf16.msra.mxu1 %v3190_v13  ;;  %2260 = vmatprep.subr.bf16.mxu0 %v3194_v16 }
  0x99   :  { %2292 = vmatprep.subr.bf16.mxu1 %v3197_v19 }
  0x9b   :  { %2262 = vmatpush1.bf16.msra.mxu0 %v3200_v23 }
  0x9c   :  { %2294 = vmatpush1.bf16.msra.mxu1 %v3204_v26  ;;  %2264 = vmatprep.subr.bf16.mxu0 %v3208_v29 }
  0x9d   :  { %2296 = vmatprep.subr.bf16.mxu1 %v3211_v32 }
  0x9f   :  { %2266 = vmatpush1.bf16.msra.mxu0 %v3214_v36 }
  0xa0   :  { %2298 = vmatpush1.bf16.msra.mxu1 %v3218_v40  ;;  %2268 = vmatprep.subr.bf16.mxu0 %v3222_v44 }
  0xa1   :  { %2300 = vmatprep.subr.bf16.mxu1 %v3225_v48 }
  0xa3   :  { %2270 = vmatpush1.bf16.msra.mxu0 %v3228_v54 }
  0xa4   :  { %2302 = vmatpush1.bf16.msra.mxu1 %v3232_v58  ;;  %2272 = vmatprep.subr.bf16.mxu0 %v3236_v62 }
  0xa5   :  { %2304 = vmatprep.subr.bf16.mxu1 %v3239_v4 }
  0xa7   :  { %2274 = vmatpush1.bf16.msra.mxu0 %v3242_v9 }
  0xa8   :  { %2306 = vmatpush1.bf16.msra.mxu1 %v3246_v14  ;;  %2276 = vmatprep.subr.bf16.mxu0 %v3250_v18 }
  0xa9   :  { %2308 = vmatprep.subr.bf16.mxu1 %v3253_v22 }
  0xab   :  { %2278 = vmatpush1.bf16.msra.mxu0 %v3256_v25 }
  0xac   :  { %2310 = vmatpush1.bf16.msra.mxu1 %v3260_v27  ;;  %2312 = vmatprep.subr.bf16.mxu0 %v3157_v38 }
  0xad   :  { %2344 = vmatprep.subr.bf16.mxu1 %v3159_v41 }
 0x161   :  { %v576_v39 = vpop.f32.mrb[0].mxu0 }
 0x162   :  { %v2719_v43 = vadd.f32 %v576_v39, %v3310_v35  ;;  %v647_v45 = vpop.f32.mrb[0].mxu1  ;;  %v578_v46 = vpop.f32.mrb[1].mxu0 }
 0x163   :  { %v2720_v49 = vadd.f32 %v578_v46, %v3312_v37  ;;  %v649_v51 = vpop.f32.mrb[1].mxu1  ;;  %v2735_v5 = vadd.f32 %v647_v45, %v3319_v1 }
 0x164   :  { %v2042_v52 = vmul.f32 -1.442695, %v2719_v43  ;;  %v2736_v61 = vadd.f32 %v649_v51, %v3316_v57 }
 0x165   :  { %v2043_v55 = vmul.f32 -1.442695, %v2720_v49 }
 0x166   :  { %2795 = vpow2.f32 %v2042_v52  ;;  %v2044_v2 = vmul.f32 -1.442695, %v2736_v61 }
 0x167   :  { %2797 = vpow2.f32 %v2043_v55 }
 0x168   :  { %2799 = vpow2.f32 %v2044_v2 }
 0x169   :  { %2801 = vtanh.f32 %v2735_v5 }
 0x170   :  { %v2796_v7 = vpop.eup %2795 }
 0x171   :  { %v2798_v8 = vpop.eup %2797  ;;  %v659_v11 = vadd.f32 1.0, %v2796_v7 }
 0x172   :  { %v665_v12 = vadd.f32 1.0, %v2798_v8  ;;  %v2800_v15 = vpop.eup %2799 }
 0x173   :  { %2803 = vrcp.f32 %v659_v11  ;;  %v2802_v17 = vpop.eup %2801  ;;  %v672_v28 = vadd.f32 1.0, %v2800_v15 }
 0x174   :  { %2805 = vrcp.f32 %v665_v12 }
 0x175   :  { %2807 = vrcp.f32 %v672_v28 }
 0x17d   :  { %v2804_v20 = vpop.eup %2803 }
 0x17e   :  { %v2806_v21 = vpop.eup %2805  ;;  %v676_v24 = vmul.f32 %v2804_v20, %v2802_v17 }
 0x17f   :  { %v675_v30 = vmul.f32 0.0, %v2806_v21  ;;  %v2808_v33 = vpop.eup %2807 }
 0x181   :  { %v3322_v31 = vadd.f32 %v676_v24, %v675_v30 }
 0x183   :  { %2809 = vtanh.f32 %v3322_v31 }
 0x18d   :  { %v2810_v34 = vpop.eup %2809 }
 0x18e   :  { %v679_v39 = vmul.f32 %v2810_v34, %v2808_v33 }
 0x190   :  { %752 = vmatmul.mubr.f32.vlgmr.msra.gmra.mrb[2].mxu0 %v679_v39  ;;  %823 = vmatmul.mubr.f32.vlgmr.msra.gmra.mrb[2].mxu1 %v679_v39 }
 0x191   :  { %2314 = vmatpush1.bf16.msra.mxu0 %v3161_v47  ;;  %2346 = vmatpush1.bf16.msra.mxu1 %v3164_v50 }
 0x192   :  { %2316 = vmatprep.subr.bf16.mxu0 %v3167_v53  ;;  %2348 = vmatprep.subr.bf16.mxu1 %v3169_v56 }
 0x193   :  { %928 = vmatprep.mubr.f32.mxu0 %v3049_v0  ;;  %999 = vmatprep.mubr.f32.mxu1 %v3049_v0 }
 0x195   :  { %2318 = vmatpush1.bf16.msra.mxu0 %v3172_v60  ;;  %2350 = vmatpush1.bf16.msra.mxu1 %v3176_v63 }
 0x196   :  { %2320 = vmatprep.subr.bf16.mxu0 %v3180_v3  ;;  %2352 = vmatprep.subr.bf16.mxu1 %v3183_v6 }
 0x199   :  { %2322 = vmatpush1.bf16.msra.mxu0 %v3186_v10  ;;  %2354 = vmatpush1.bf16.msra.mxu1 %v3190_v13 }
 0x19a   :  { %2324 = vmatprep.subr.bf16.mxu0 %v3194_v16  ;;  %2356 = vmatprep.subr.bf16.mxu1 %v3197_v19 }
 0x19d   :  { %2326 = vmatpush1.bf16.msra.mxu0 %v3200_v23  ;;  %2358 = vmatpush1.bf16.msra.mxu1 %v3204_v26 }
 0x19e   :  { %2328 = vmatprep.subr.bf16.mxu0 %v3208_v29  ;;  %2360 = vmatprep.subr.bf16.mxu1 %v3211_v32 }
 0x1a1   :  { %2330 = vmatpush1.bf16.msra.mxu0 %v3214_v36  ;;  %2362 = vmatpush1.bf16.msra.mxu1 %v3218_v40 }
 0x1a2   :  { %2332 = vmatprep.subr.bf16.mxu0 %v3222_v44  ;;  %2364 = vmatprep.subr.bf16.mxu1 %v3225_v48 }
 0x1a5   :  { %2334 = vmatpush1.bf16.msra.mxu0 %v3228_v54  ;;  %2366 = vmatpush1.bf16.msra.mxu1 %v3232_v58 }
 0x1a6   :  { %2336 = vmatprep.subr.bf16.mxu0 %v3236_v62  ;;  %2368 = vmatprep.subr.bf16.mxu1 %v3239_v4 }
 0x1a9   :  { %2338 = vmatpush1.bf16.msra.mxu0 %v3242_v9  ;;  %2370 = vmatpush1.bf16.msra.mxu1 %v3246_v14 }
 0x1aa   :  { %2340 = vmatprep.subr.bf16.mxu0 %v3250_v18  ;;  %2372 = vmatprep.subr.bf16.mxu1 %v3253_v22 }
 0x1ad   :  { %2342 = vmatpush1.bf16.msra.mxu0 %v3256_v25  ;;  %2374 = vmatpush1.bf16.msra.mxu1 %v3260_v27 }
 0x1ae   :  { %2376 = vmatprep.subr.bf16.mxu0 %v3157_v38  ;;  %2408 = vmatprep.subr.bf16.mxu1 %v3159_v41 }
 0x263   :  { %v753_v42 = vpop.f32.mrb[2].mxu0  ;;  %v824_v43 = vpop.f32.mrb[2].mxu1 }
 0x264   :  { %v2721_v45 = vadd.f32 %v753_v42, %v3310_v35  ;;  %v755_v46 = vpop.f32.mrb[3].mxu0  ;;  %v826_v49 = vpop.f32.mrb[3].mxu1  ;;  %v2737_v2 = vadd.f32 %v824_v43, %v3319_v1 }
 0x265   :  { %v2722_v51 = vadd.f32 %v755_v46, %v3312_v37  ;;  %v2738_v59 = vadd.f32 %v826_v49, %v3316_v57 }
 0x266   :  { %v2045_v52 = vmul.f32 -1.442695, %v2721_v45 }
 0x267   :  { %v2046_v55 = vmul.f32 -1.442695, %v2722_v51  ;;  %v2047_v61 = vmul.f32 -1.442695, %v2738_v59 }
 0x268   :  { %2811 = vpow2.f32 %v2045_v52 }
 0x269   :  { %2813 = vpow2.f32 %v2046_v55 }
 0x26a   :  { %2815 = vpow2.f32 %v2047_v61 }
 0x26b   :  { %2817 = vtanh.f32 %v2737_v2 }
 0x272   :  { %v2812_v5 = vpop.eup %2811 }
 0x273   :  { %v2814_v7 = vpop.eup %2813  ;;  %v836_v8 = vadd.f32 1.0, %v2812_v5 }
 0x274   :  { %v842_v11 = vadd.f32 1.0, %v2814_v7  ;;  %v2816_v12 = vpop.eup %2815 }
 0x275   :  { %2819 = vrcp.f32 %v836_v8  ;;  %v2818_v15 = vpop.eup %2817  ;;  %v849_v24 = vadd.f32 1.0, %v2816_v12 }
 0x276   :  { %2821 = vrcp.f32 %v842_v11 }
 0x277   :  { %2823 = vrcp.f32 %v849_v24 }
 0x27f   :  { %v2820_v17 = vpop.eup %2819 }
 0x280   :  { %v2822_v20 = vpop.eup %2821  ;;  %v853_v21 = vmul.f32 %v2820_v17, %v2818_v15 }
 0x281   :  { %v852_v28 = vmul.f32 %v2822_v20, %v3322_v31  ;;  %v2824_v33 = vpop.eup %2823 }
 0x283   :  { %v3364_v30 = vadd.f32 %v853_v21, %v852_v28 }
 0x285   :  { %2825 = vtanh.f32 %v3364_v30 }
 0x28f   :  { %v2826_v34 = vpop.eup %2825 }
 0x290   :  { %v856_v39 = vmul.f32 %v2826_v34, %v2824_v33 }
 0x292   :  { %929 = vmatmul.mubr.f32.vlgmr.msra.gmra.mrb[4].mxu0 %v856_v39  ;;  %1000 = vmatmul.mubr.f32.vlgmr.msra.gmra.mrb[4].mxu1 %v856_v39 }
 0x293   :  { %2378 = vmatpush1.bf16.msra.mxu0 %v3161_v47  ;;  %2410 = vmatpush1.bf16.msra.mxu1 %v3164_v50 }
 0x294   :  { %2380 = vmatprep.subr.bf16.mxu0 %v3167_v53  ;;  %2412 = vmatprep.subr.bf16.mxu1 %v3169_v56 }
 0x295   :  { %1105 = vmatprep.mubr.f32.mxu0 %v3049_v0  ;;  %1176 = vmatprep.mubr.f32.mxu1 %v3049_v0 }
 0x297   :  { %2382 = vmatpush1.bf16.msra.mxu0 %v3172_v60  ;;  %2414 = vmatpush1.bf16.msra.mxu1 %v3176_v63 }
 0x298   :  { %2384 = vmatprep.subr.bf16.mxu0 %v3180_v3  ;;  %2416 = vmatprep.subr.bf16.mxu1 %v3183_v6 }
 0x29b   :  { %2386 = vmatpush1.bf16.msra.mxu0 %v3186_v10  ;;  %2418 = vmatpush1.bf16.msra.mxu1 %v3190_v13 }
 0x29c   :  { %2388 = vmatprep.subr.bf16.mxu0 %v3194_v16  ;;  %2420 = vmatprep.subr.bf16.mxu1 %v3197_v19 }
 0x29f   :  { %2390 = vmatpush1.bf16.msra.mxu0 %v3200_v23  ;;  %2422 = vmatpush1.bf16.msra.mxu1 %v3204_v26 }
 0x2a0   :  { %2392 = vmatprep.subr.bf16.mxu0 %v3208_v29  ;;  %2424 = vmatprep.subr.bf16.mxu1 %v3211_v32 }
 0x2a3   :  { %2394 = vmatpush1.bf16.msra.mxu0 %v3214_v36  ;;  %2426 = vmatpush1.bf16.msra.mxu1 %v3218_v40 }
 0x2a4   :  { %2396 = vmatprep.subr.bf16.mxu0 %v3222_v44  ;;  %2428 = vmatprep.subr.bf16.mxu1 %v3225_v48 }
 0x2a7   :  { %2398 = vmatpush1.bf16.msra.mxu0 %v3228_v54  ;;  %2430 = vmatpush1.bf16.msra.mxu1 %v3232_v58 }
 0x2a8   :  { %2400 = vmatprep.subr.bf16.mxu0 %v3236_v62  ;;  %2432 = vmatprep.subr.bf16.mxu1 %v3239_v4 }
 0x2ab   :  { %2402 = vmatpush1.bf16.msra.mxu0 %v3242_v9  ;;  %2434 = vmatpush1.bf16.msra.mxu1 %v3246_v14 }
 0x2ac   :  { %2404 = vmatprep.subr.bf16.mxu0 %v3250_v18  ;;  %2436 = vmatprep.subr.bf16.mxu1 %v3253_v22 }
 0x2af   :  { %2406 = vmatpush1.bf16.msra.mxu0 %v3256_v25  ;;  %2438 = vmatpush1.bf16.msra.mxu1 %v3260_v27 }
 0x2b0   :  { %2440 = vmatprep.subr.bf16.mxu0 %v3157_v38  ;;  %2472 = vmatprep.subr.bf16.mxu1 %v3159_v41 }
 0x365   :  { %v930_v31 = vpop.f32.mrb[4].mxu0  ;;  %v1001_v42 = vpop.f32.mrb[4].mxu1 }
 0x366   :  { %v2723_v43 = vadd.f32 %v930_v31, %v3310_v35  ;;  %v932_v45 = vpop.f32.mrb[5].mxu0  ;;  %v1003_v46 = vpop.f32.mrb[5].mxu1  ;;  %v2739_v61 = vadd.f32 %v1001_v42, %v3319_v1 }
 0x367   :  { %v2724_v49 = vadd.f32 %v932_v45, %v3312_v37  ;;  %v2740_v55 = vadd.f32 %v1003_v46, %v3316_v57 }
 0x368   :  { %v2048_v51 = vmul.f32 -1.442695, %v2723_v43 }
 0x369   :  { %v2049_v52 = vmul.f32 -1.442695, %v2724_v49  ;;  %v2050_v59 = vmul.f32 -1.442695, %v2740_v55 }
 0x36a   :  { %2827 = vpow2.f32 %v2048_v51 }
 0x36b   :  { %2829 = vpow2.f32 %v2049_v52 }
 0x36c   :  { %2831 = vpow2.f32 %v2050_v59 }
 0x36d   :  { %2833 = vtanh.f32 %v2739_v61 }
 0x374   :  { %v2828_v2 = vpop.eup %2827 }
 0x375   :  { %v2830_v5 = vpop.eup %2829  ;;  %v1013_v7 = vadd.f32 1.0, %v2828_v2 }
 0x376   :  { %v1019_v8 = vadd.f32 1.0, %v2830_v5  ;;  %v2832_v11 = vpop.eup %2831 }
 0x377   :  { %2835 = vrcp.f32 %v1013_v7  ;;  %v2834_v12 = vpop.eup %2833  ;;  %v1026_v21 = vadd.f32 1.0, %v2832_v11 }
 0x378   :  { %2837 = vrcp.f32 %v1019_v8 }
 0x379   :  { %2839 = vrcp.f32 %v1026_v21 }
 0x381   :  { %v2836_v15 = vpop.eup %2835 }
 0x382   :  { %v2838_v17 = vpop.eup %2837  ;;  %v1030_v20 = vmul.f32 %v2836_v15, %v2834_v12 }
 0x383   :  { %v1029_v24 = vmul.f32 %v2838_v17, %v3364_v30  ;;  %v2840_v33 = vpop.eup %2839 }
 0x385   :  { %v3406_v28 = vadd.f32 %v1030_v20, %v1029_v24 }
 0x387   :  { %2841 = vtanh.f32 %v3406_v28 }
 0x391   :  { %v2842_v34 = vpop.eup %2841 }
 0x392   :  { %v1033_v39 = vmul.f32 %v2842_v34, %v2840_v33 }
 0x394   :  { %1106 = vmatmul.mubr.f32.vlgmr.msra.gmra.mrb[6].mxu0 %v1033_v39  ;;  %1177 = vmatmul.mubr.f32.vlgmr.msra.gmra.mrb[6].mxu1 %v1033_v39 }
 0x395   :  { %2442 = vmatpush1.bf16.msra.mxu0 %v3161_v47  ;;  %2474 = vmatpush1.bf16.msra.mxu1 %v3164_v50 }
 0x396   :  { %2444 = vmatprep.subr.bf16.mxu0 %v3167_v53  ;;  %2476 = vmatprep.subr.bf16.mxu1 %v3169_v56 }
 0x397   :  { %1282 = vmatprep.mubr.f32.mxu0 %v3049_v0  ;;  %1353 = vmatprep.mubr.f32.mxu1 %v3049_v0 }
 0x399   :  { %2446 = vmatpush1.bf16.msra.mxu0 %v3172_v60  ;;  %2478 = vmatpush1.bf16.msra.mxu1 %v3176_v63 }
 0x39a   :  { %2448 = vmatprep.subr.bf16.mxu0 %v3180_v3  ;;  %2480 = vmatprep.subr.bf16.mxu1 %v3183_v6 }
 0x39d   :  { %2450 = vmatpush1.bf16.msra.mxu0 %v3186_v10  ;;  %2482 = vmatpush1.bf16.msra.mxu1 %v3190_v13 }
 0x39e   :  { %2452 = vmatprep.subr.bf16.mxu0 %v3194_v16  ;;  %2484 = vmatprep.subr.bf16.mxu1 %v3197_v19 }
 0x3a1   :  { %2454 = vmatpush1.bf16.msra.mxu0 %v3200_v23  ;;  %2486 = vmatpush1.bf16.msra.mxu1 %v3204_v26 }
 0x3a2   :  { %2456 = vmatprep.subr.bf16.mxu0 %v3208_v29  ;;  %2488 = vmatprep.subr.bf16.mxu1 %v3211_v32 }
 0x3a5   :  { %2458 = vmatpush1.bf16.msra.mxu0 %v3214_v36  ;;  %2490 = vmatpush1.bf16.msra.mxu1 %v3218_v40 }
 0x3a6   :  { %2460 = vmatprep.subr.bf16.mxu0 %v3222_v44  ;;  %2492 = vmatprep.subr.bf16.mxu1 %v3225_v48 }
 0x3a9   :  { %2462 = vmatpush1.bf16.msra.mxu0 %v3228_v54  ;;  %2494 = vmatpush1.bf16.msra.mxu1 %v3232_v58 }
 0x3aa   :  { %2464 = vmatprep.subr.bf16.mxu0 %v3236_v62  ;;  %2496 = vmatprep.subr.bf16.mxu1 %v3239_v4 }
 0x3ad   :  { %2466 = vmatpush1.bf16.msra.mxu0 %v3242_v9  ;;  %2498 = vmatpush1.bf16.msra.mxu1 %v3246_v14 }
 0x3ae   :  { %2468 = vmatprep.subr.bf16.mxu0 %v3250_v18  ;;  %2500 = vmatprep.subr.bf16.mxu1 %v3253_v22 }
 0x3b1   :  { %2470 = vmatpush1.bf16.msra.mxu0 %v3256_v25  ;;  %2502 = vmatpush1.bf16.msra.mxu1 %v3260_v27 }
 0x3b2   :  { %2504 = vmatprep.subr.bf16.mxu0 %v3157_v38  ;;  %2536 = vmatprep.subr.bf16.mxu1 %v3159_v41 }
 0x467   :  { %v1107_v30 = vpop.f32.mrb[6].mxu0  ;;  %v1178_v31 = vpop.f32.mrb[6].mxu1 }
 0x468   :  { %v2725_v42 = vadd.f32 %v1107_v30, %v3310_v35  ;;  %v1109_v43 = vpop.f32.mrb[7].mxu0  ;;  %v1180_v45 = vpop.f32.mrb[7].mxu1  ;;  %v2741_v59 = vadd.f32 %v1178_v31, %v3319_v1 }
 0x469   :  { %v2726_v46 = vadd.f32 %v1109_v43, %v3312_v37  ;;  %v2742_v52 = vadd.f32 %v1180_v45, %v3316_v57 }
 0x46a   :  { %v2051_v49 = vmul.f32 -1.442695, %v2725_v42 }
 0x46b   :  { %v2052_v51 = vmul.f32 -1.442695, %v2726_v46  ;;  %v2053_v55 = vmul.f32 -1.442695, %v2742_v52 }
 0x46c   :  { %2843 = vpow2.f32 %v2051_v49 }
 0x46d   :  { %2845 = vpow2.f32 %v2052_v51 }
 0x46e   :  { %2847 = vpow2.f32 %v2053_v55 }
 0x46f   :  { %2849 = vtanh.f32 %v2741_v59 }
 0x476   :  { %v2844_v61 = vpop.eup %2843 }
 0x477   :  { %v2846_v2 = vpop.eup %2845  ;;  %v1190_v5 = vadd.f32 1.0, %v2844_v61 }
 0x478   :  { %v1196_v7 = vadd.f32 1.0, %v2846_v2  ;;  %v2848_v8 = vpop.eup %2847 }
 0x479   :  { %2851 = vrcp.f32 %v1190_v5  ;;  %v2850_v11 = vpop.eup %2849  ;;  %v1203_v20 = vadd.f32 1.0, %v2848_v8 }
 0x47a   :  { %2853 = vrcp.f32 %v1196_v7 }
 0x47b   :  { %2855 = vrcp.f32 %v1203_v20 }
 0x483   :  { %v2852_v12 = vpop.eup %2851 }
 0x484   :  { %v2854_v15 = vpop.eup %2853  ;;  %v1207_v17 = vmul.f32 %v2852_v12, %v2850_v11 }
 0x485   :  { %v1206_v21 = vmul.f32 %v2854_v15, %v3406_v28  ;;  %v2856_v33 = vpop.eup %2855 }
 0x487   :  { %v3448_v24 = vadd.f32 %v1207_v17, %v1206_v21 }
 0x489   :  { %2857 = vtanh.f32 %v3448_v24 }
 0x493   :  { %v2858_v34 = vpop.eup %2857 }
 0x494   :  { %v1210_v39 = vmul.f32 %v2858_v34, %v2856_v33 }
 0x496   :  { %1283 = vmatmul.mubr.f32.vlgmr.msra.gmra.mrb[8].mxu0 %v1210_v39  ;;  %1354 = vmatmul.mubr.f32.vlgmr.msra.gmra.mrb[8].mxu1 %v1210_v39 }
 0x497   :  { %2506 = vmatpush1.bf16.msra.mxu0 %v3161_v47  ;;  %2538 = vmatpush1.bf16.msra.mxu1 %v3164_v50 }
 0x498   :  { %2508 = vmatprep.subr.bf16.mxu0 %v3167_v53  ;;  %2540 = vmatprep.subr.bf16.mxu1 %v3169_v56 }
 0x499   :  { %1459 = vmatprep.mubr.f32.mxu0 %v3049_v0  ;;  %1530 = vmatprep.mubr.f32.mxu1 %v3049_v0 }
 0x49b   :  { %2510 = vmatpush1.bf16.msra.mxu0 %v3172_v60  ;;  %2542 = vmatpush1.bf16.msra.mxu1 %v3176_v63 }
 0x49c   :  { %2512 = vmatprep.subr.bf16.mxu0 %v3180_v3  ;;  %2544 = vmatprep.subr.bf16.mxu1 %v3183_v6 }
 0x49f   :  { %2514 = vmatpush1.bf16.msra.mxu0 %v3186_v10  ;;  %2546 = vmatpush1.bf16.msra.mxu1 %v3190_v13 }
 0x4a0   :  { %2516 = vmatprep.subr.bf16.mxu0 %v3194_v16  ;;  %2548 = vmatprep.subr.bf16.mxu1 %v3197_v19 }
 0x4a3   :  { %2518 = vmatpush1.bf16.msra.mxu0 %v3200_v23  ;;  %2550 = vmatpush1.bf16.msra.mxu1 %v3204_v26 }
 0x4a4   :  { %2520 = vmatprep.subr.bf16.mxu0 %v3208_v29  ;;  %2552 = vmatprep.subr.bf16.mxu1 %v3211_v32 }
 0x4a7   :  { %2522 = vmatpush1.bf16.msra.mxu0 %v3214_v36  ;;  %2554 = vmatpush1.bf16.msra.mxu1 %v3218_v40 }
 0x4a8   :  { %2524 = vmatprep.subr.bf16.mxu0 %v3222_v44  ;;  %2556 = vmatprep.subr.bf16.mxu1 %v3225_v48 }
 0x4ab   :  { %2526 = vmatpush1.bf16.msra.mxu0 %v3228_v54  ;;  %2558 = vmatpush1.bf16.msra.mxu1 %v3232_v58 }
 0x4ac   :  { %2528 = vmatprep.subr.bf16.mxu0 %v3236_v62  ;;  %2560 = vmatprep.subr.bf16.mxu1 %v3239_v4 }
 0x4af   :  { %2530 = vmatpush1.bf16.msra.mxu0 %v3242_v9  ;;  %2562 = vmatpush1.bf16.msra.mxu1 %v3246_v14 }
 0x4b0   :  { %2532 = vmatprep.subr.bf16.mxu0 %v3250_v18  ;;  %2564 = vmatprep.subr.bf16.mxu1 %v3253_v22 }
 0x4b3   :  { %2534 = vmatpush1.bf16.msra.mxu0 %v3256_v25  ;;  %2566 = vmatpush1.bf16.msra.mxu1 %v3260_v27 }
 0x4b4   :  { %2568 = vmatprep.subr.bf16.mxu0 %v3157_v38  ;;  %2600 = vmatprep.subr.bf16.mxu1 %v3159_v41 }
 0x569   :  { %v1284_v28 = vpop.f32.mrb[8].mxu0  ;;  %v1355_v30 = vpop.f32.mrb[8].mxu1 }
 0x56a   :  { %v2727_v31 = vadd.f32 %v1284_v28, %v3310_v35  ;;  %v1286_v42 = vpop.f32.mrb[9].mxu0  ;;  %v1357_v43 = vpop.f32.mrb[9].mxu1  ;;  %v2743_v55 = vadd.f32 %v1355_v30, %v3319_v1 }
 0x56b   :  { %v2728_v45 = vadd.f32 %v1286_v42, %v3312_v37  ;;  %v2744_v51 = vadd.f32 %v1357_v43, %v3316_v57 }
 0x56c   :  { %v2054_v46 = vmul.f32 -1.442695, %v2727_v31 }
 0x56d   :  { %v2055_v49 = vmul.f32 -1.442695, %v2728_v45  ;;  %v2056_v52 = vmul.f32 -1.442695, %v2744_v51 }
 0x56e   :  { %2859 = vpow2.f32 %v2054_v46 }
 0x56f   :  { %2861 = vpow2.f32 %v2055_v49 }
 0x570   :  { %2863 = vpow2.f32 %v2056_v52 }
 0x571   :  { %2865 = vtanh.f32 %v2743_v55 }
 0x578   :  { %v2860_v59 = vpop.eup %2859 }
 0x579   :  { %v2862_v61 = vpop.eup %2861  ;;  %v1367_v2 = vadd.f32 1.0, %v2860_v59 }
 0x57a   :  { %v1373_v5 = vadd.f32 1.0, %v2862_v61  ;;  %v2864_v7 = vpop.eup %2863 }
 0x57b   :  { %2867 = vrcp.f32 %v1367_v2  ;;  %v2866_v8 = vpop.eup %2865  ;;  %v1380_v17 = vadd.f32 1.0, %v2864_v7 }
 0x57c   :  { %2869 = vrcp.f32 %v1373_v5 }
 0x57d   :  { %2871 = vrcp.f32 %v1380_v17 }
 0x585   :  { %v2868_v11 = vpop.eup %2867 }
 0x586   :  { %v2870_v12 = vpop.eup %2869  ;;  %v1384_v15 = vmul.f32 %v2868_v11, %v2866_v8 }
 0x587   :  { %v1383_v20 = vmul.f32 %v2870_v12, %v3448_v24  ;;  %v2872_v33 = vpop.eup %2871 }
 0x589   :  { %v3490_v21 = vadd.f32 %v1384_v15, %v1383_v20 }
 0x58b   :  { %2873 = vtanh.f32 %v3490_v21 }
 0x595   :  { %v2874_v34 = vpop.eup %2873 }
 0x596   :  { %v1387_v39 = vmul.f32 %v2874_v34, %v2872_v33  ;;  %v1927_v34 = vld [vmem:[#allocation11 + $0x18] sm:$0xff] }
 0x598   :  { %1460 = vmatmul.mubr.f32.vlgmr.msra.gmra.mrb[10].mxu0 %v1387_v39  ;;  %1531 = vmatmul.mubr.f32.vlgmr.msra.gmra.mrb[10].mxu1 %v1387_v39 }
 0x599   :  { %2570 = vmatpush1.bf16.msra.mxu0 %v3161_v47  ;;  %2602 = vmatpush1.bf16.msra.mxu1 %v3164_v50 }
 0x59a   :  { %2572 = vmatprep.subr.bf16.mxu0 %v3167_v53  ;;  %2604 = vmatprep.subr.bf16.mxu1 %v3169_v56 }
 0x59b   :  { %1636 = vmatprep.mubr.f32.mxu0 %v3049_v0  ;;  %1707 = vmatprep.mubr.f32.mxu1 %v3049_v0 }
 0x59d   :  { %2574 = vmatpush1.bf16.msra.mxu0 %v3172_v60  ;;  %2606 = vmatpush1.bf16.msra.mxu1 %v3176_v63 }
 0x59e   :  { %2576 = vmatprep.subr.bf16.mxu0 %v3180_v3  ;;  %2608 = vmatprep.subr.bf16.mxu1 %v3183_v6 }
 0x5a1   :  { %2578 = vmatpush1.bf16.msra.mxu0 %v3186_v10  ;;  %2610 = vmatpush1.bf16.msra.mxu1 %v3190_v13 }
 0x5a2   :  { %2580 = vmatprep.subr.bf16.mxu0 %v3194_v16  ;;  %2612 = vmatprep.subr.bf16.mxu1 %v3197_v19 }
 0x5a5   :  { %2582 = vmatpush1.bf16.msra.mxu0 %v3200_v23  ;;  %2614 = vmatpush1.bf16.msra.mxu1 %v3204_v26 }
 0x5a6   :  { %2584 = vmatprep.subr.bf16.mxu0 %v3208_v29  ;;  %2616 = vmatprep.subr.bf16.mxu1 %v3211_v32 }
 0x5a9   :  { %2586 = vmatpush1.bf16.msra.mxu0 %v3214_v36  ;;  %2618 = vmatpush1.bf16.msra.mxu1 %v3218_v40 }
 0x5aa   :  { %2588 = vmatprep.subr.bf16.mxu0 %v3222_v44  ;;  %2620 = vmatprep.subr.bf16.mxu1 %v3225_v48 }
 0x5ad   :  { %2590 = vmatpush1.bf16.msra.mxu0 %v3228_v54  ;;  %2622 = vmatpush1.bf16.msra.mxu1 %v3232_v58 }
 0x5ae   :  { %2592 = vmatprep.subr.bf16.mxu0 %v3236_v62  ;;  %2624 = vmatprep.subr.bf16.mxu1 %v3239_v4 }
 0x5b1   :  { %2594 = vmatpush1.bf16.msra.mxu0 %v3242_v9  ;;  %2626 = vmatpush1.bf16.msra.mxu1 %v3246_v14 }
 0x5b2   :  { %2596 = vmatprep.subr.bf16.mxu0 %v3250_v18  ;;  %2628 = vmatprep.subr.bf16.mxu1 %v3253_v22 }
 0x5b5   :  { %2598 = vmatpush1.bf16.msra.mxu0 %v3256_v25  ;;  %2630 = vmatpush1.bf16.msra.mxu1 %v3260_v27 }
 0x5b6   :  { %2632 = vmatprep.subr.bf16.mxu0 %v3157_v38  ;;  %2664 = vmatprep.subr.bf16.mxu1 %v3159_v41 }
 0x66b   :  { %v1461_v24 = vpop.f32.mrb[10].mxu0  ;;  %v1532_v28 = vpop.f32.mrb[10].mxu1 }
 0x66c   :  { %v2729_v30 = vadd.f32 %v1461_v24, %v3310_v35  ;;  %v1463_v31 = vpop.f32.mrb[11].mxu0  ;;  %v1534_v42 = vpop.f32.mrb[11].mxu1  ;;  %v2745_v52 = vadd.f32 %v1532_v28, %v3319_v1  ;;  %v1928_v24 = vld [vmem:[#allocation11 + $0x20] sm:$0xff]  ;;  %v1929_v28 = vld [vmem:[#allocation11 + $0x28] sm:$0xff] }
 0x66d   :  { %v2730_v43 = vadd.f32 %v1463_v31, %v3312_v37  ;;  %v2746_v49 = vadd.f32 %v1534_v42, %v3316_v57  ;;  %v1930_v31 = vld [vmem:[#allocation11 + $0x30] sm:$0xff]  ;;  %v1931_v42 = vld [vmem:[#allocation11 + $0x38] sm:$0xff] }
 0x66e   :  { %v2057_v45 = vmul.f32 -1.442695, %v2729_v30  ;;  %v2702_v30 = vpack.c.bf16 %v1929_v28, %v1928_v24 }
 0x66f   :  { %v2058_v46 = vmul.f32 -1.442695, %v2730_v43  ;;  %v2059_v51 = vmul.f32 -1.442695, %v2746_v49  ;;  %v2705_v43 = vpack.c.bf16 %v1931_v42, %v1930_v31 }
 0x670   :  { %2875 = vpow2.f32 %v2057_v45  ;;  %v1932_v45 = vld [vmem:[#allocation11 + $0x40] sm:$0xff] }
 0x671   :  { %2877 = vpow2.f32 %v2058_v46  ;;  %v1933_v46 = vld [vmem:[#allocation11 + $0x48] sm:$0xff] }
 0x672   :  { %2879 = vpow2.f32 %v2059_v51  ;;  %v2708_v49 = vpack.c.bf16 %v1933_v46, %v1932_v45  ;;  %v1934_v51 = vld [vmem:[#allocation11 + $0x50] sm:$0xff] }
 0x673   :  { %2881 = vtanh.f32 %v2745_v52  ;;  %v1935_v52 = vld [vmem:[#allocation11 + $0x58] sm:$0xff] }
 0x67a   :  { %v2876_v38 = vpop.eup %2875 }
 0x67b   :  { %v2878_v55 = vpop.eup %2877  ;;  %v1544_v41 = vadd.f32 1.0, %v2876_v38  ;;  %v1936_v38 = vld [vmem:[#allocation11 + $0x60] sm:$0xff] }
 0x67c   :  { %v1550_v59 = vadd.f32 1.0, %v2878_v55  ;;  %v2880_v61 = vpop.eup %2879  ;;  %v2711_v55 = vpack.c.bf16 %v1935_v52, %v1934_v51 }
 0x67d   :  { %2883 = vrcp.f32 %v1544_v41  ;;  %v2882_v2 = vpop.eup %2881  ;;  %v1557_v11 = vadd.f32 1.0, %v2880_v61  ;;  %v1937_v41 = vld [vmem:[#allocation11 + $0x68] sm:$0xff]  ;;  %v1938_v61 = vld [vmem:[#allocation11 + $0x70] sm:$0xff] }
 0x67e   :  { %2885 = vrcp.f32 %v1550_v59  ;;  %v2714_v59 = vpack.c.bf16 %v1937_v41, %v1936_v38 }
 0x67f   :  { %2887 = vrcp.f32 %v1557_v11 }
 0x687   :  { %v2884_v5 = vpop.eup %2883 }
 0x688   :  { %v2886_v7 = vpop.eup %2885  ;;  %v1561_v8 = vmul.f32 %v2884_v5, %v2882_v2  ;;  %v1939_v2 = vld [vmem:[#allocation11 + $0x78] sm:$0xff] }
 0x689   :  { %v1560_v12 = vmul.f32 %v2886_v7, %v3490_v21  ;;  %v2888_v17 = vpop.eup %2887  ;;  %v1926_v21 = vld [vmem:[#allocation11 + $0x10] sm:$0xff]  ;;  %v2717_v5 = vpack.c.bf16 %v1939_v2, %v1938_v61 }
 0x68a   :  { %v2699_v39 = vpack.c.bf16 %v1927_v34, %v1926_v21 }
 0x68b   :  { %v3532_v15 = vadd.f32 %v1561_v8, %v1560_v12 }
 0x68d   :  { %2889 = vtanh.f32 %v3532_v15 }
 0x697   :  { %v2890_v20 = vpop.eup %2889 }
 0x698   :  { %v1564_v33 = vmul.f32 %v2890_v20, %v2888_v17 }
 0x69a   :  { %1637 = vmatmul.mubr.f32.vlgmr.msra.gmra.mrb[12].mxu0 %v1564_v33  ;;  %1708 = vmatmul.mubr.f32.vlgmr.msra.gmra.mrb[12].mxu1 %v1564_v33 }
 0x69b   :  { %2634 = vmatpush1.bf16.msra.mxu0 %v3161_v47  ;;  %2666 = vmatpush1.bf16.msra.mxu1 %v3164_v50 }
 0x69c   :  { %2636 = vmatprep.subr.bf16.mxu0 %v3167_v53  ;;  %2668 = vmatprep.subr.bf16.mxu1 %v3169_v56 }
 0x69d   :  { %1813 = vmatprep.mubr.f32.mxu0 %v3049_v0  ;;  %1884 = vmatprep.mubr.f32.mxu1 %v3049_v0 }
 0x69f   :  { %2638 = vmatpush1.bf16.msra.mxu0 %v3172_v60  ;;  %2670 = vmatpush1.bf16.msra.mxu1 %v3176_v63 }
 0x6a0   :  { %2640 = vmatprep.subr.bf16.mxu0 %v3180_v3  ;;  %2672 = vmatprep.subr.bf16.mxu1 %v3183_v6 }
 0x6a3   :  { %2642 = vmatpush1.bf16.msra.mxu0 %v3186_v10  ;;  %2674 = vmatpush1.bf16.msra.mxu1 %v3190_v13 }
 0x6a4   :  { %2644 = vmatprep.subr.bf16.mxu0 %v3194_v16  ;;  %2676 = vmatprep.subr.bf16.mxu1 %v3197_v19 }
 0x6a7   :  { %2646 = vmatpush1.bf16.msra.mxu0 %v3200_v23  ;;  %2678 = vmatpush1.bf16.msra.mxu1 %v3204_v26 }
 0x6a8   :  { %2648 = vmatprep.subr.bf16.mxu0 %v3208_v29  ;;  %2680 = vmatprep.subr.bf16.mxu1 %v3211_v32 }
 0x6ab   :  { %2650 = vmatpush1.bf16.msra.mxu0 %v3214_v36  ;;  %2682 = vmatpush1.bf16.msra.mxu1 %v3218_v40 }
 0x6ac   :  { %2652 = vmatprep.subr.bf16.mxu0 %v3222_v44  ;;  %2684 = vmatprep.subr.bf16.mxu1 %v3225_v48 }
 0x6af   :  { %2654 = vmatpush1.bf16.msra.mxu0 %v3228_v54  ;;  %2686 = vmatpush1.bf16.msra.mxu1 %v3232_v58 }
 0x6b0   :  { %2656 = vmatprep.subr.bf16.mxu0 %v3236_v62  ;;  %2688 = vmatprep.subr.bf16.mxu1 %v3239_v4 }
 0x6b3   :  { %2658 = vmatpush1.bf16.msra.mxu0 %v3242_v9  ;;  %2690 = vmatpush1.bf16.msra.mxu1 %v3246_v14 }
 0x6b4   :  { %2660 = vmatprep.subr.bf16.mxu0 %v3250_v18  ;;  %2692 = vmatprep.subr.bf16.mxu1 %v3253_v22  ;;  %v1924_v18 = vld [vmem:[#allocation11] sm:$0xff]  ;;  %v1925_v22 = vld [vmem:[#allocation11 + $0x8] sm:$0xff] }
 0x6b7   :  { %2662 = vmatpush1.bf16.msra.mxu0 %v3256_v25  ;;  %2694 = vmatpush1.bf16.msra.mxu1 %v3260_v27  ;;  %v2696_v25 = vpack.c.bf16 %v1925_v22, %v1924_v18  ;;  %v3050_v27 = vmov 0.0|0.0  }
 0x6b8   :  { %2695 = vmatprep.subr.bf16.mxu0 %v3050_v27 }
 0x76d   :  { %v1638_v47 = vpop.f32.mrb[12].mxu0  ;;  %v1709_v50 = vpop.f32.mrb[12].mxu1 }
 0x76e   :  { %v2731_v53 = vadd.f32 %v1638_v47, %v3310_v35  ;;  %v1640_v56 = vpop.f32.mrb[13].mxu0  ;;  %v1711_v60 = vpop.f32.mrb[13].mxu1  ;;  %v2747_v16 = vadd.f32 %v1709_v50, %v3319_v1 }
 0x76f   :  { %v2732_v63 = vadd.f32 %v1640_v56, %v3312_v37  ;;  %v2748_v10 = vadd.f32 %v1711_v60, %v3316_v57 }
 0x770   :  { %v2060_v3 = vmul.f32 -1.442695, %v2731_v53 }
 0x771   :  { %v2061_v6 = vmul.f32 -1.442695, %v2732_v63  ;;  %v2062_v13 = vmul.f32 -1.442695, %v2748_v10 }
 0x772   :  { %2891 = vpow2.f32 %v2060_v3 }
 0x773   :  { %2893 = vpow2.f32 %v2061_v6 }
 0x774   :  { %2895 = vpow2.f32 %v2062_v13 }
 0x775   :  { %2897 = vtanh.f32 %v2747_v16 }
 0x77c   :  { %v2892_v19 = vpop.eup %2891 }
 0x77d   :  { %v2894_v23 = vpop.eup %2893  ;;  %v1721_v26 = vadd.f32 1.0, %v2892_v19 }
 0x77e   :  { %v1727_v29 = vadd.f32 1.0, %v2894_v23  ;;  %v2896_v32 = vpop.eup %2895 }
 0x77f   :  { %2899 = vrcp.f32 %v1721_v26  ;;  %v2898_v36 = vpop.eup %2897  ;;  %v1734_v54 = vadd.f32 1.0, %v2896_v32  ;;  %v2066_v26 = vld [vmem:[%s3601_s5] ss:$0 sm:$0xff] }
 0x780   :  { %2901 = vrcp.f32 %v1727_v29 }
 0x781   :  { %2903 = vrcp.f32 %v1734_v54 }
 0x789   :  { %v2900_v40 = vpop.eup %2899 }
 0x78a   :  { %v2902_v44 = vpop.eup %2901  ;;  %v1738_v48 = vmul.f32 %v2900_v40, %v2898_v36 }
 0x78b   :  { %v1737_v58 = vmul.f32 %v2902_v44, %v3532_v15  ;;  %v2904_v4 = vpop.eup %2903 }
 0x78d   :  { %v3572_v62 = vadd.f32 %v1738_v48, %v1737_v58 }
 0x78f   :  { %2905 = vtanh.f32 %v3572_v62 }
 0x799   :  { %v2906_v9 = vpop.eup %2905 }
 0x79a   :  { %v1741_v14 = vmul.f32 %v2906_v9, %v2904_v4 }
 0x79c   :  { %1814 = vmatmul.mubr.f32.vlgmr.msra.gmra.mrb[14].mxu0 %v1741_v14  ;;  %1885 = vmatmul.mubr.f32.vlgmr.msra.gmra.mrb[14].mxu1 %v1741_v14 }
 0x79d   :  { %2697 = vmatpush3.bf16.msra.mxu0 %v2696_v25  ;;  %2116 = vmatprep.mubr.msk.f32.mxu0 %vm3051_vm0, %v3049_v0 }
 0x79e   :  { %2698 = vmatprep.subr.bf16.mxu0 %v3050_v27 }
 0x7a1   :  { %2700 = vmatpush3.bf16.msra.mxu0 %v2699_v39 }
 0x7a2   :  { %2701 = vmatprep.subr.bf16.mxu0 %v3050_v27 }
 0x7a5   :  { %2703 = vmatpush3.bf16.msra.mxu0 %v2702_v30 }
 0x7a6   :  { %2704 = vmatprep.subr.bf16.mxu0 %v3050_v27 }
 0x7a9   :  { %2706 = vmatpush3.bf16.msra.mxu0 %v2705_v43 }
 0x7aa   :  { %2707 = vmatprep.subr.bf16.mxu0 %v3050_v27 }
 0x7ad   :  { %2709 = vmatpush3.bf16.msra.mxu0 %v2708_v49 }
 0x7ae   :  { %2710 = vmatprep.subr.bf16.mxu0 %v3050_v27 }
 0x7b1   :  { %2712 = vmatpush3.bf16.msra.mxu0 %v2711_v55 }
 0x7b2   :  { %2713 = vmatprep.subr.bf16.mxu0 %v3050_v27 }
 0x7b5   :  { %2715 = vmatpush3.bf16.msra.mxu0 %v2714_v59 }
 0x7b6   :  { %2716 = vmatprep.subr.bf16.mxu0 %v3050_v27 }
 0x7b9   :  { %2718 = vmatpush3.bf16.msra.mxu0 %v2717_v5 }
 0x86f   :  { %v1815_v7 = vpop.f32.mrb[14].mxu0  ;;  %v1886_v8 = vpop.f32.mrb[14].mxu1 }
 0x870   :  { %v2733_v11 = vadd.f32 %v1815_v7, %v3310_v35  ;;  %v1817_v12 = vpop.f32.mrb[15].mxu0  ;;  %v1888_v15 = vpop.f32.mrb[15].mxu1  ;;  %v2749_v50 = vadd.f32 %v1886_v8, %v3319_v1 }
 0x871   :  { %v2734_v17 = vadd.f32 %v1817_v12, %v3312_v37  ;;  %v2750_v0 = vadd.f32 %v1888_v15, %v3316_v57 }
 0x872   :  { %v2063_v20 = vmul.f32 -1.442695, %v2733_v11 }
 0x873   :  { %v2064_v33 = vmul.f32 -1.442695, %v2734_v17  ;;  %v2065_v47 = vmul.f32 -1.442695, %v2750_v0 }
 0x874   :  { %2907 = vpow2.f32 %v2063_v20 }
 0x875   :  { %2909 = vpow2.f32 %v2064_v33 }
 0x876   :  { %2911 = vpow2.f32 %v2065_v47 }
 0x877   :  { %2913 = vtanh.f32 %v2749_v50 }
 0x87e   :  { %v2908_v53 = vpop.eup %2907 }
 0x87f   :  { %v2910_v56 = vpop.eup %2909  ;;  %v1898_v60 = vadd.f32 1.0, %v2908_v53 }
 0x880   :  { %v1904_v63 = vadd.f32 1.0, %v2910_v56  ;;  %v2912_v35 = vpop.eup %2911 }
 0x881   :  { %2915 = vrcp.f32 %v1898_v60  ;;  %v2914_v3 = vpop.eup %2913  ;;  %v1911_v13 = vadd.f32 1.0, %v2912_v35 }
 0x882   :  { %2917 = vrcp.f32 %v1904_v63 }
 0x883   :  { %2919 = vrcp.f32 %v1911_v13 }
 0x88b   :  { %v2916_v37 = vpop.eup %2915 }
 0x88c   :  { %v2918_v6 = vpop.eup %2917  ;;  %v1915_v10 = vmul.f32 %v2916_v37, %v2914_v3 }
 0x88d   :  { %v1914_v16 = vmul.f32 %v2918_v6, %v3572_v62  ;;  %v2920_v1 = vpop.eup %2919 }
 0x88f   :  { %v1916_v57 = vadd.f32 %v1915_v10, %v1914_v16 }
 0x891   :  { %2921 = vtanh.f32 %v1916_v57 }
 0x89b   :  { %v2922_v19 = vpop.eup %2921 }
 0x89c   :  { %v1918_v23 = vmul.f32 %v2922_v19, %v2920_v1 }
 0x89e   :  { %2117 = vmatmul.mubr.f32.vlgmr.msra.gmra.mrb[16].mxu0 %v1918_v23 }
 0x971   :  { %v2013_v29 = vpop.f32.mrb[16].mxu0 }
 0x972   :  { %v2014_v32 = vadd.f32 %v2066_v26, %v2013_v29  ;;  %v2118_v36 = vpop.f32.mrb[17].mxu0 }
 0x974   :  { %2017 = vst [vmem:[#allocation13] sm:$0xff] %v2014_v32 }
 0x975   :  { %3022 = shalt.err (!%p3019_p8)
}
 0x976   :  { %s3023_s28 = scalar_lea.hbm %s3602_s6, 128 }
 0x977   :  { %p3024_p9 = scmp.ne.s32.totalorder %s3602_s6, %s3023_s28  ;;  %p3027_p10 = scmp.lt.u32.totalorder %s3023_s28, %s3602_s6 }
 0x979   :  { %p3029_p11 = pnand %p3027_p10, %p3024_p9 }
 0x97b   :  { %3032 = shalt.err (!%p3029_p11)
}
 0x97c   :  { %2027 = dma.vmem_to_hbm [thread:$0]  %s2025_s24, 128, %s3602_s6, [#allocation7]  }
 0x97d   :  { %3039 = dma.done.wait [#allocation7], 128  }
 0x97e   :  { %3040 = vsyncadd [#allocation7], 4294967168 }
 0x97f   :  { %2031 = vsyncpa [#allocation6], 1 }
 0x980   :  { %2032 = vsyncpa [#allocation9], 1 }
 0x981   :  { %2033 = vsyncpa [#allocation12], 1 }
 0x982   :  { %2034 = vsyncpa [#allocation7], 1 }

</bundles_post_ra>
